<compile_context>
chip_gen: v7x
topology: tpu7x:2x2x1
jax: 0.10.0
libtpu: 0.0.40
codegen_flags: <defaults>
</compile_context>

<pallas_src>
import functools

import jax
import jax.numpy as jnp
from jax.experimental import pallas as pl
from jax.experimental.pallas import tpu as pltpu


def _round_up(n, m):
    return ((n + m - 1) // m) * m


def _mask_tail_cols(a, k, blk_k, n_valid):
    """Zero columns of `a` (last dim == blk_k) at/after global column n_valid."""
    col = jax.lax.broadcasted_iota(jnp.int32, a.shape, dimension=1)
    return jnp.where(col < (n_valid - k * blk_k), a, jnp.zeros_like(a))


def _logits_kernel(x_ref, w_ref, o_ref, acc_ref=None, *, blk_k, d_valid=None):
    # x_ref: [tm, tk] (batch rows, feature slice)
    # w_ref: [tn, tk] (prototype rows, feature slice)
    # o_ref: [tm, tn] logits tile; resident across the k (reduction) grid axis.
    k = pl.program_id(2)
    acc = o_ref if acc_ref is None else acc_ref   # accumulate in-place when f32 out

    @pl.when(k == 0)
    def _():
        acc[...] = jnp.zeros_like(acc)

    x = x_ref[...]
    w = w_ref[...]
    if d_valid is not None:            # D ragged: zero garbage tail columns
        x = _mask_tail_cols(x, k, blk_k, d_valid)
        w = _mask_tail_cols(w, k, blk_k, d_valid)

    acc[...] += jax.lax.dot_general(
        x, w,
        dimension_numbers=(((1,), (1,)), ((), ())),   # contract shared D dim
        preferred_element_type=jnp.float32)

    if acc_ref is not None:            # narrow out_dtype: single cast at the end
        @pl.when(k == pl.num_programs(2) - 1)
        def _():
            o_ref[...] = acc_ref[...].astype(o_ref.dtype)


def _row_norm_kernel(x_ref, norm_ref, *, blk_k, d_valid=None):
    # x_ref: [bm, bk]; norm_ref: [bm, 1] f32, resident across the k grid axis.
    k = pl.program_id(1)

    @pl.when(k == 0)
    def _():
        norm_ref[...] = jnp.zeros_like(norm_ref)

    x = x_ref[...].astype(jnp.float32)
    if d_valid is not None:
        x = _mask_tail_cols(x, k, blk_k, d_valid)
    norm_ref[...] += jnp.sum(x * x, axis=-1, keepdims=True)

    @pl.when(k == pl.num_programs(1) - 1)
    def _():
        norm_ref[...] = jnp.sqrt(norm_ref[...])


def _physical_vmem_bytes():
    try:
        return int(pltpu.get_tpu_info().vmem_capacity_bytes)
    except Exception:
        return 64 * 1024 * 1024   # v7x has the smallest per-core VMEM; safe fallback


def _tile_footprint(tm, tn, tk, in_bytes, out_bytes, use_scratch):
    fp = 2 * (tm + tn) * tk * in_bytes     # double-buffered x / W input tiles
    fp += 2 * tm * tn * out_bytes          # double-buffered logits output tile
    if use_scratch:
        fp += tm * tn * 4                  # f32 accumulator scratch (bf16 out only)
    return fp


@functools.partial(jax.jit, static_argnames=("tm", "tn", "tk", "out_dtype"))
def virtual_softmax_logits(x, prototypes, *, tm=1024, tn=1024, tk=1024,
                           out_dtype=jnp.float32):
    """Returns (logits [B, C] out_dtype, virtual-class logit ||x||_2 [B, 1] f32)."""
    B, D = x.shape
    C, Dw = prototypes.shape
    assert D == Dw, "feature dims must match"
    assert x.dtype == prototypes.dtype, "x / prototype dtypes must match"

    in_bytes = jnp.dtype(x.dtype).itemsize
    out_bytes = jnp.dtype(out_dtype).itemsize
    use_scratch = jnp.dtype(out_dtype) != jnp.dtype(jnp.float32)

    # ---- tile selection -----------------------------------------------------
    # Lane dims aligned to 256 (full v6e/v7x MXU width) when the dim allows it.
    tm = min(tm, _round_up(B, 8))
    tn = min(tn, _round_up(C, 256) if C > 128 else 128)
    tk = min(tk, _round_up(D, 256) if D > 128 else 128)

    # Shrink until the footprint fits a chip-aware VMEM budget.  Shrink tk first
    # (does not hurt arithmetic intensity), then the larger of the tm/tn tiles.
    budget = int(0.70 * _physical_vmem_bytes())
    while _tile_footprint(tm, tn, tk, in_bytes, out_bytes, use_scratch) > budget:
        if tk > 512:
            tk = _round_up(tk // 2, 128)
        elif max(tm, tn) > 256:
            if tn >= tm:
                tn = _round_up(tn // 2, 128)
            else:
                tm = _round_up(tm // 2, 8)
        else:
            break

    grid = (pl.cdiv(B, tm), pl.cdiv(C, tn), pl.cdiv(D, tk))
    d_ragged = (D % tk) != 0

    cost = pl.CostEstimate(
        flops=2 * B * C * D,
        transcendentals=0,
        # Include the W (once per i-tile) and X (once per j-tile) re-fetch
        # factors so XLA sees how memory-bound the kernel really is.
        bytes_accessed=grid[0] * C * D * in_bytes
                       + grid[1] * B * D * in_bytes
                       + B * C * out_bytes,
    )

    kernel = functools.partial(_logits_kernel, blk_k=tk,
                               d_valid=D if d_ragged else None)

    logits = pl.pallas_call(
        kernel,
        out_shape=jax.ShapeDtypeStruct((B, C), out_dtype),
        grid_spec=pltpu.PrefetchScalarGridSpec(
            num_scalar_prefetch=0,
            grid=grid,
            in_specs=[
                pl.BlockSpec((tm, tk), lambda i, j, k: (i, k)),   # x tile
                pl.BlockSpec((tn, tk), lambda i, j, k: (j, k)),   # prototype tile
            ],
            out_specs=pl.BlockSpec((tm, tn), lambda i, j, k: (i, j)),
            scratch_shapes=([pltpu.VMEM((tm, tn), jnp.float32)]
                            if use_scratch else []),
        ),
        compiler_params=pltpu.CompilerParams(
            # Row-norm is decoupled, so batch AND class axes are both
            # megacore-parallel; the reduction axis stays last / arbitrary.
            dimension_semantics=("parallel", "parallel", "arbitrary"),
            vmem_limit_bytes=budget,
        ),
        cost_estimate=cost,
    )(x, prototypes)

    # ---- virtual-class logit ||x||_2: separate tiny kernel -------------------
    bm = min(512, _round_up(B, 8))
    bk = min(2048, _round_up(D, 128))
    norm_kernel = functools.partial(_row_norm_kernel, blk_k=bk,
                                    d_valid=D if (D % bk) != 0 else None)
    norms = pl.pallas_call(
        norm_kernel,
        out_shape=jax.ShapeDtypeStruct((B, 1), jnp.float32),
        grid_spec=pltpu.PrefetchScalarGridSpec(
            num_scalar_prefetch=0,
            grid=(pl.cdiv(B, bm), pl.cdiv(D, bk)),
            in_specs=[pl.BlockSpec((bm, bk), lambda i, k: (i, k))],
            out_specs=pl.BlockSpec((bm, 1), lambda i, k: (i, 0)),
        ),
        compiler_params=pltpu.CompilerParams(
            dimension_semantics=("parallel", "arbitrary")),
        cost_estimate=pl.CostEstimate(
            flops=2 * B * D, transcendentals=B,
            bytes_accessed=B * D * in_bytes + B * 4),
    )(x)

    return logits, norms


class MSCEVirtualSoftmax:
    """Faithful mirror of the PyTorch module's (empty) forward semantics."""

    def __init__(self, prototypes):
        # Reference __init__ discards `prototypes`; kept so the Pallas
        # demonstration kernel has something to compute against.
        self.prototypes = prototypes

    def forward(self):
        # TODO(synk): reference forward() is `pass` (returns None); there is no
        # compute to translate, so the kernels above implement the inferred
        # virtual-softmax logit computation instead.
        return None

    def __call__(self):
        return self.forward()


if __name__ == "__main__":
    key = jax.random.PRNGKey(0)
    kx, kw = jax.random.split(key)

    # ---- aligned shapes (single tile after clamping) --------------------------
    B, D, C = 128, 512, 256
    x = jax.random.normal(kx, (B, D), dtype=jnp.float32)
    prototypes = jax.random.normal(kw, (C, D), dtype=jnp.float32)

    module = MSCEVirtualSoftmax(prototypes)
    assert module.forward() is None   # exact reference-forward semantics

    logits, xnorm = virtual_softmax_logits(x, prototypes)
    logits, xnorm = jax.block_until_ready((logits, xnorm))

    ref_logits = jax.lax.dot_general(
        x, prototypes, dimension_numbers=(((1,), (1,)), ((), ())),
        precision=jax.lax.Precision.HIGHEST)
    ref_norm = jnp.sqrt(jnp.sum(x * x, axis=-1, keepdims=True))

    assert logits.shape == (B, C) and xnorm.shape == (B, 1)
    assert jnp.allclose(logits, ref_logits, atol=2e-3, rtol=2e-3)
    assert jnp.allclose(xnorm, ref_norm, atol=2e-3, rtol=2e-3)

    # ---- bf16 inputs + bf16 output (scratch-accumulator path), tolerance-checked
    xb = x.astype(jnp.bfloat16)
    wb = prototypes.astype(jnp.bfloat16)
    logits_b, xnorm_b = virtual_softmax_logits(xb, wb, out_dtype=jnp.bfloat16)
    logits_b, xnorm_b = jax.block_until_ready((logits_b, xnorm_b))

    ref_logits_b = jax.lax.dot_general(
        xb.astype(jnp.float32), wb.astype(jnp.float32),
        dimension_numbers=(((1,), (1,)), ((), ())),
        precision=jax.lax.Precision.HIGHEST)
    ref_norm_b = jnp.sqrt(jnp.sum(xb.astype(jnp.float32) ** 2, axis=-1,
                                  keepdims=True))
    assert logits_b.shape == (B, C) and logits_b.dtype == jnp.bfloat16
    assert jnp.allclose(logits_b.astype(jnp.float32), ref_logits_b,
                        atol=1e-1, rtol=2e-2)
    assert jnp.allclose(xnorm_b, ref_norm_b, atol=1e-2, rtol=1e-2)

    # ---- ragged shapes: exercises pl.cdiv grid + in-kernel D-tail masking ------
    B2, D2, C2 = 100, 384, 200
    x2 = jax.random.normal(kx, (B2, D2), dtype=jnp.float32)
    w2 = jax.random.normal(kw, (C2, D2), dtype=jnp.float32)
    logits2, xnorm2 = virtual_softmax_logits(x2, w2)
    logits2, xnorm2 = jax.block_until_ready((logits2, xnorm2))

    ref2 = jax.lax.dot_general(
        x2, w2, dimension_numbers=(((1,), (1,)), ((), ())),
        precision=jax.lax.Precision.HIGHEST)
    refn2 = jnp.sqrt(jnp.sum(x2 * x2, axis=-1, keepdims=True))
    assert logits2.shape == (B2, C2) and xnorm2.shape == (B2, 1)
    assert jnp.allclose(logits2, ref2, atol=2e-3, rtol=2e-3)
    assert jnp.allclose(xnorm2, refn2, atol=2e-3, rtol=2e-3)

    print("KERNEL_OK")
</pallas_src>

<mosaic_0001>
module attributes {stable_mosaic.version = 11 : i64} {
  func.func @_row_norm_kernel(%arg0: i32, %arg1: i32, %arg2: memref<128x512xf32, #tpu.memory_space<vmem>>, %arg3: memref<128x1xf32, #tpu.memory_space<vmem>>) attributes {dimension_semantics = [#tpu.dimension_semantics<parallel>, #tpu.dimension_semantics<arbitrary>], iteration_bounds = array<i64: 1, 1>, scalar_prefetch = 0 : i64, scratch_operands = 0 : i64, tpu.core_type = #tpu.core_type<tc>, window_params = [{transform_indices = @transform_0, window_bounds = array<i64: 128, 512>}, {transform_indices = @transform_1, window_bounds = array<i64: 128, 1>}]} {
    %c0_i32 = arith.constant 0 : i32
    %0 = arith.cmpi eq, %arg1, %c0_i32 : i32
    %1 = arith.extui %0 : i1 to i32
    %c0_i32_0 = arith.constant 0 : i32
    %2 = arith.cmpi ne, %1, %c0_i32_0 : i32
    scf.if %2 {
      %cst_8 = arith.constant 0.000000e+00 : f32
      %13 = vector.broadcast %cst_8 : f32 to vector<128x1xf32>
      %c0_9 = arith.constant 0 : index
      %c0_10 = arith.constant 0 : index
      %14 = vector.load %arg3[%c0_9, %c0_10] : memref<128x1xf32, #tpu.memory_space<vmem>>, vector<128x1xf32>
      tpu.vector_store %arg3[%c0_9, %c0_10], %13 {strides = array<i32>} : memref<128x1xf32, #tpu.memory_space<vmem>>, vector<128x1xf32>,
    } else {
    }
    %c0 = arith.constant 0 : index
    %c0_1 = arith.constant 0 : index
    %3 = vector.load %arg2[%c0, %c0_1] : memref<128x512xf32, #tpu.memory_space<vmem>>, vector<128x512xf32>
    %c0_2 = arith.constant 0 : index
    %c0_3 = arith.constant 0 : index
    %4 = vector.load %arg3[%c0_2, %c0_3] : memref<128x1xf32, #tpu.memory_space<vmem>>, vector<128x1xf32>
    %5 = arith.mulf %3, %3 : vector<128x512xf32>
    %cst = arith.constant dense<0.000000e+00> : vector<128xf32>
    %6 = vector.multi_reduction <add>, %5, %cst [1] : vector<128x512xf32> to vector<128xf32>
    %7 = vector.shape_cast %6 : vector<128xf32> to vector<128x1xf32>
    %8 = arith.addf %4, %7 : vector<128x1xf32>
    %c0_4 = arith.constant 0 : index
    %c0_5 = arith.constant 0 : index
    %9 = vector.load %arg3[%c0_4, %c0_5] : memref<128x1xf32, #tpu.memory_space<vmem>>, vector<128x1xf32>
    tpu.vector_store %arg3[%c0_4, %c0_5], %8 {strides = array<i32>} : memref<128x1xf32, #tpu.memory_space<vmem>>, vector<128x1xf32>,
    %c0_i32_6 = arith.constant 0 : i32
    %10 = arith.cmpi eq, %arg1, %c0_i32_6 : i32
    %11 = arith.extui %10 : i1 to i32
    %c0_i32_7 = arith.constant 0 : i32
    %12 = arith.cmpi ne, %11, %c0_i32_7 : i32
    scf.if %12 {
      %c0_8 = arith.constant 0 : index
      %c0_9 = arith.constant 0 : index
      %13 = vector.load %arg3[%c0_8, %c0_9] : memref<128x1xf32, #tpu.memory_space<vmem>>, vector<128x1xf32>
      %14 = math.sqrt %13 : vector<128x1xf32>
      %c0_10 = arith.constant 0 : index
      %c0_11 = arith.constant 0 : index
      %15 = vector.load %arg3[%c0_10, %c0_11] : memref<128x1xf32, #tpu.memory_space<vmem>>, vector<128x1xf32>
      tpu.vector_store %arg3[%c0_10, %c0_11], %14 {strides = array<i32>} : memref<128x1xf32, #tpu.memory_space<vmem>>, vector<128x1xf32>,
    } else {
    }
    return
  }
  func.func @transform_0(%arg0: i32, %arg1: i32) -> (i32, i32) {
    %c0_i32 = arith.constant 0 : i32
    return %arg0, %arg1 : i32, i32
  }
  func.func @transform_1(%arg0: i32, %arg1: i32) -> (i32, i32) {
    %c0_i32 = arith.constant 0 : i32
    %c0_i32_0 = arith.constant 0 : i32
    return %arg0, %c0_i32 : i32, i32
  }
}

module attributes {stable_mosaic.version = 11 : i64} {
  func.func @_logits_kernel(%arg0: i32, %arg1: i32, %arg2: i32, %arg3: memref<128x512xf32, #tpu.memory_space<vmem>>, %arg4: memref<256x512xf32, #tpu.memory_space<vmem>>, %arg5: memref<128x256xf32, #tpu.memory_space<vmem>>) attributes {dimension_semantics = [#tpu.dimension_semantics<parallel>, #tpu.dimension_semantics<parallel>, #tpu.dimension_semantics<arbitrary>], iteration_bounds = array<i64: 1, 1, 1>, scalar_prefetch = 0 : i64, scratch_operands = 0 : i64, tpu.core_type = #tpu.core_type<tc>, window_params = [{transform_indices = @transform_0, window_bounds = array<i64: 128, 512>}, {transform_indices = @transform_1, window_bounds = array<i64: 256, 512>}, {transform_indices = @transform_2, window_bounds = array<i64: 128, 256>}]} {
    %c0_i32 = arith.constant 0 : i32
    %0 = arith.cmpi eq, %arg2, %c0_i32 : i32
    %1 = arith.extui %0 : i1 to i32
    %c0_i32_0 = arith.constant 0 : i32
    %2 = arith.cmpi ne, %1, %c0_i32_0 : i32
    scf.if %2 {
      %cst_8 = arith.constant 0.000000e+00 : f32
      %9 = vector.broadcast %cst_8 : f32 to vector<128x256xf32>
      %c0_9 = arith.constant 0 : index
      %c0_10 = arith.constant 0 : index
      %10 = vector.load %arg5[%c0_9, %c0_10] : memref<128x256xf32, #tpu.memory_space<vmem>>, vector<128x256xf32>
      tpu.vector_store %arg5[%c0_9, %c0_10], %9 {strides = array<i32>} : memref<128x256xf32, #tpu.memory_space<vmem>>, vector<128x256xf32>,
    } else {
    }
    %c0 = arith.constant 0 : index
    %c0_1 = arith.constant 0 : index
    %3 = vector.load %arg3[%c0, %c0_1] : memref<128x512xf32, #tpu.memory_space<vmem>>, vector<128x512xf32>
    %c0_2 = arith.constant 0 : index
    %c0_3 = arith.constant 0 : index
    %4 = vector.load %arg4[%c0_2, %c0_3] : memref<256x512xf32, #tpu.memory_space<vmem>>, vector<256x512xf32>
    %c0_4 = arith.constant 0 : index
    %c0_5 = arith.constant 0 : index
    %5 = vector.load %arg5[%c0_4, %c0_5] : memref<128x256xf32, #tpu.memory_space<vmem>>, vector<128x256xf32>
    %cst = arith.constant dense<0.000000e+00> : vector<128x256xf32>
    %6 = tpu.matmul %3, %4, %cst {dimension_numbers = #tpu.dot_dimension_numbers<[1], [1], [0], [0], [0, 0, 1, 0], [], []>} : vector<128x512xf32>, vector<256x512xf32>, vector<128x256xf32> -> vector<128x256xf32>
    %7 = arith.addf %5, %6 : vector<128x256xf32>
    %c0_6 = arith.constant 0 : index
    %c0_7 = arith.constant 0 : index
    %8 = vector.load %arg5[%c0_6, %c0_7] : memref<128x256xf32, #tpu.memory_space<vmem>>, vector<128x256xf32>
    tpu.vector_store %arg5[%c0_6, %c0_7], %7 {strides = array<i32>} : memref<128x256xf32, #tpu.memory_space<vmem>>, vector<128x256xf32>,
    return
  }
  func.func @transform_0(%arg0: i32, %arg1: i32, %arg2: i32) -> (i32, i32) {
    %c0_i32 = arith.constant 0 : i32
    return %arg0, %arg2 : i32, i32
  }
  func.func @transform_1(%arg0: i32, %arg1: i32, %arg2: i32) -> (i32, i32) {
    %c0_i32 = arith.constant 0 : i32
    return %arg1, %arg2 : i32, i32
  }
  func.func @transform_2(%arg0: i32, %arg1: i32, %arg2: i32) -> (i32, i32) {
    %c0_i32 = arith.constant 0 : i32
    return %arg0, %arg1 : i32, i32
  }
}

</mosaic_0001>

<bundles_post_ra>
// kernel: virtual_softmax_logits.3
= control target key start
LH: loop header
LB: loop body
LE: loop exit
PB: predicated region body
PF: predicated region fallthrough
CT: control target
= control target key end

     0   :  { %6 = vsyncpa [#allocation3], 0  ;;  %s512_s6 = smov [#allocation2]   ;;  %s916_s0 = inlined_call_operand.hbm [shape: f32[128,512], index: 0, kind: input, shape index: {}]   ;;  %s917_s1 = inlined_call_operand.vmem [shape: f32[128,1], index: 1, kind: output, shape index: {}]  }
   0x1   :  { %s12_s7 = sshll.u32 %s512_s6, 4  ;;  %s488_s10 = scalar_lea.hbm %s916_s0, 8192  ;;  %s13_s7 = int_to_ptr.vmem [resolvable:$true] %s12_s7 }
   0x2   :  { %p489_p0 = scmp.ne.s32.totalorder %s916_s0, %s488_s10  ;;  %p492_p1 = scmp.lt.u32.totalorder %s488_s10, %s916_s0 }
   0x4   :  { %p494_p2 = pnand %p492_p1, %p489_p0 }
   0x6   :  { %497 = shalt.err (!%p494_p2)
}
   0x7   :  { %s498_s15 = scalar_lea.vmem %s13_s7, 8192  ;;  %p503_p4 = scmp.lt.s32.totalorder %s13_s7, %s13_s7 }
   0x8   :  { %p499_p3 = scmp.ne.s32.totalorder %s13_s7, %s498_s15  ;;  %p504_p5 = scmp.lt.s32.totalorder %s498_s15, %s498_s15 }
   0xa   :  { %p505_p6 = por %p504_p5, %p503_p4 }
   0xc   :  { %p506_p7 = pnand %p505_p6, %p499_p3 }
   0xe   :  { %509 = shalt.err (!%p506_p7)
}
   0xf   :  { %s513_s16 = smov 512   ;;  %s514_s17 = smov 32  }
  0x10   :  { %18 = dma.hbm_to_vmem [thread:$0]  %s916_s0, 8192, %s13_s7, [#allocation3], %s513_s16, %s513_s16, %s514_s17  }
  0x11   :  { %510 = dma.done.wait [#allocation3], 8192  }
  0x12   :  { %511 = vsyncadd [#allocation3], 4294959104  ;;  %vm26_vm0 = vcmask 7168   ;;  %v515_v0 = vmov 0.0   ;;  %v51_v1 = vld [vmem:[#allocation2 + $0x40] sm:$0xff]  ;;  %v52_v2 = vld [vmem:[#allocation2 + $0x48] sm:$0xff] }
  0x13   :  { %29 = vst.msk [vmem:[%s917_s1 + $0x10] sm:$0xff] %vm26_vm0, %v515_v0  ;;  %27 = vst.msk [vmem:[%s917_s1] sm:$0xff] %vm26_vm0, %v515_v0  ;;  %v53_v3 = vld [vmem:[#allocation2 + $0x50] sm:$0xff]  ;;  %v54_v4 = vld [vmem:[#allocation2 + $0x58] sm:$0xff]  ;;  %v131_v5 = vmul.f32 %v51_v1, %v51_v1  ;;  %v132_v6 = vmul.f32 %v52_v2, %v52_v2 }
  0x14   :  { %28 = vst.msk [vmem:[%s917_s1 + $0x8] sm:$0xff] %vm26_vm0, %v515_v0  ;;  %30 = vst.msk [vmem:[%s917_s1 + $0x18] sm:$0xff] %vm26_vm0, %v515_v0  ;;  %v133_v7 = vmul.f32 %v53_v3, %v53_v3  ;;  %v43_v8 = vld [vmem:[#allocation2] sm:$0xff]  ;;  %v44_v9 = vld [vmem:[#allocation2 + $0x8] sm:$0xff]  ;;  %v134_v10 = vmul.f32 %v54_v4, %v54_v4 }
  0x15   :  { %31 = vst.msk [vmem:[%s917_s1 + $0x20] sm:$0xff] %vm26_vm0, %v515_v0  ;;  %32 = vst.msk [vmem:[%s917_s1 + $0x28] sm:$0xff] %vm26_vm0, %v515_v0  ;;  %v45_v11 = vld [vmem:[#allocation2 + $0x10] sm:$0xff]  ;;  %v46_v12 = vld [vmem:[#allocation2 + $0x18] sm:$0xff]  ;;  %v123_v13 = vmul.f32 %v43_v8, %v43_v8  ;;  %v124_v14 = vmul.f32 %v44_v9, %v44_v9  ;;  %v197_v16 = vadd.f32 %v132_v6, %v131_v5 }
  0x16   :  { %33 = vst.msk [vmem:[%s917_s1 + $0x30] sm:$0xff] %vm26_vm0, %v515_v0  ;;  %34 = vst.msk [vmem:[%s917_s1 + $0x38] sm:$0xff] %vm26_vm0, %v515_v0  ;;  %v55_v15 = vld [vmem:[#allocation2 + $0x60] sm:$0xff]  ;;  %v125_v17 = vmul.f32 %v45_v11, %v45_v11  ;;  %v126_v18 = vmul.f32 %v46_v12, %v46_v12  ;;  %v56_v19 = vld [vmem:[#allocation2 + $0x68] sm:$0xff] }
  0x17   :  { %35 = vst.msk [vmem:[%s917_s1 + $0x40] sm:$0xff] %vm26_vm0, %v515_v0  ;;  %36 = vst.msk [vmem:[%s917_s1 + $0x48] sm:$0xff] %vm26_vm0, %v515_v0  ;;  %v57_v20 = vld [vmem:[#allocation2 + $0x70] sm:$0xff]  ;;  %v58_v21 = vld [vmem:[#allocation2 + $0x78] sm:$0xff]  ;;  %v135_v22 = vmul.f32 %v55_v15, %v55_v15  ;;  %v187_v23 = vadd.f32 %v124_v14, %v123_v13  ;;  %v136_v24 = vmul.f32 %v56_v19, %v56_v19 }
  0x18   :  { %37 = vst.msk [vmem:[%s917_s1 + $0x50] sm:$0xff] %vm26_vm0, %v515_v0  ;;  %38 = vst.msk [vmem:[%s917_s1 + $0x58] sm:$0xff] %vm26_vm0, %v515_v0  ;;  %v137_v25 = vmul.f32 %v57_v20, %v57_v20  ;;  %v138_v26 = vmul.f32 %v58_v21, %v58_v21  ;;  %v47_v27 = vld [vmem:[#allocation2 + $0x20] sm:$0xff]  ;;  %v48_v28 = vld [vmem:[#allocation2 + $0x28] sm:$0xff]  ;;  %v198_v30 = vadd.f32 %v197_v16, %v133_v7 }
  0x19   :  { %39 = vst.msk [vmem:[%s917_s1 + $0x60] sm:$0xff] %vm26_vm0, %v515_v0  ;;  %40 = vst.msk [vmem:[%s917_s1 + $0x68] sm:$0xff] %vm26_vm0, %v515_v0  ;;  %v49_v29 = vld [vmem:[#allocation2 + $0x30] sm:$0xff]  ;;  %v50_v31 = vld [vmem:[#allocation2 + $0x38] sm:$0xff]  ;;  %v127_v32 = vmul.f32 %v47_v27, %v47_v27  ;;  %v128_v33 = vmul.f32 %v48_v28, %v48_v28  ;;  %v188_v37 = vadd.f32 %v187_v23, %v125_v17 }
  0x1a   :  { %41 = vst.msk [vmem:[%s917_s1 + $0x70] sm:$0xff] %vm26_vm0, %v515_v0  ;;  %42 = vst.msk [vmem:[%s917_s1 + $0x78] sm:$0xff] %vm26_vm0, %v515_v0  ;;  %v129_v34 = vmul.f32 %v49_v29, %v49_v29  ;;  %v63_v35 = vld [vmem:[#allocation2 + $0xa0] sm:$0xff]  ;;  %v64_v36 = vld [vmem:[#allocation2 + $0xa8] sm:$0xff]  ;;  %v202_v38 = vadd.f32 %v136_v24, %v135_v22  ;;  %v130_v39 = vmul.f32 %v50_v31, %v50_v31 }
  0x1b   :  { %v65_v40 = vld [vmem:[#allocation2 + $0xb0] sm:$0xff]  ;;  %v66_v41 = vld [vmem:[#allocation2 + $0xb8] sm:$0xff]  ;;  %v143_v42 = vmul.f32 %v63_v35, %v63_v35  ;;  %v59_v43 = vld [vmem:[#allocation2 + $0x80] sm:$0xff]  ;;  %v199_v44 = vadd.f32 %v198_v30, %v134_v10  ;;  %v192_v45 = vadd.f32 %v128_v33, %v127_v32  ;;  %v144_v46 = vmul.f32 %v64_v36, %v64_v36 }
  0x1c   :  { %v145_v47 = vmul.f32 %v65_v40, %v65_v40  ;;  %v60_v48 = vld [vmem:[#allocation2 + $0x88] sm:$0xff]  ;;  %v61_v49 = vld [vmem:[#allocation2 + $0x90] sm:$0xff]  ;;  %v62_v50 = vld [vmem:[#allocation2 + $0x98] sm:$0xff]  ;;  %v189_v51 = vadd.f32 %v188_v37, %v126_v18  ;;  %v203_v52 = vadd.f32 %v202_v38, %v137_v25  ;;  %v146_v53 = vmul.f32 %v66_v41, %v66_v41 }
  0x1d   :  { %v139_v54 = vmul.f32 %v59_v43, %v59_v43  ;;  %v71_v55 = vld [vmem:[#allocation2 + $0xe0] sm:$0xff]  ;;  %v72_v56 = vld [vmem:[#allocation2 + $0xe8] sm:$0xff]  ;;  %v73_v57 = vld [vmem:[#allocation2 + $0xf0] sm:$0xff]  ;;  %200 = vadd.xlane.f32.xlu1 %v199_v44  ;;  %v193_v58 = vadd.f32 %v192_v45, %v129_v34  ;;  %v212_v59 = vadd.f32 %v144_v46, %v143_v42  ;;  %v140_v60 = vmul.f32 %v60_v48, %v60_v48 }
  0x1e   :  { %v141_v61 = vmul.f32 %v61_v49, %v61_v49  ;;  %v74_v62 = vld [vmem:[#allocation2 + $0xf8] sm:$0xff]  ;;  %v67_v63 = vld [vmem:[#allocation2 + $0xc0] sm:$0xff]  ;;  %v68_v0 = vld [vmem:[#allocation2 + $0xc8] sm:$0xff]  ;;  %190 = vadd.xlane.f32.xlu0 %v189_v51  ;;  %v204_v1 = vadd.f32 %v203_v52, %v138_v26  ;;  %v142_v2 = vmul.f32 %v62_v50, %v62_v50  ;;  %v151_v3 = vmul.f32 %v71_v55, %v71_v55 }
  0x1f   :  { %v152_v4 = vmul.f32 %v72_v56, %v72_v56  ;;  %v69_v5 = vld [vmem:[#allocation2 + $0xd0] sm:$0xff]  ;;  %v70_v6 = vld [vmem:[#allocation2 + $0xd8] sm:$0xff]  ;;  %v194_v7 = vadd.f32 %v193_v58, %v130_v39  ;;  %v213_v8 = vadd.f32 %v212_v59, %v145_v47  ;;  %v207_v9 = vadd.f32 %v140_v60, %v139_v54  ;;  %v79_v11 = vld [vmem:[#allocation2 + $0x120] sm:$0xff] }
  0x20   :  { %v153_v10 = vmul.f32 %v73_v57, %v73_v57  ;;  %v80_v12 = vld [vmem:[#allocation2 + $0x128] sm:$0xff]  ;;  %v154_v13 = vmul.f32 %v74_v62, %v74_v62  ;;  %v147_v15 = vmul.f32 %v67_v63, %v67_v63  ;;  %v148_v16 = vmul.f32 %v68_v0, %v68_v0  ;;  %v81_v17 = vld [vmem:[#allocation2 + $0x130] sm:$0xff]  ;;  %v82_v18 = vld [vmem:[#allocation2 + $0x138] sm:$0xff] }
  0x21   :  { %v222_v14 = vadd.f32 %v152_v4, %v151_v3  ;;  %v75_v19 = vld [vmem:[#allocation2 + $0x100] sm:$0xff]  ;;  %205 = vadd.xlane.f32.xlu1 %v204_v1  ;;  %v214_v20 = vadd.f32 %v213_v8, %v146_v53  ;;  %v208_v21 = vadd.f32 %v207_v9, %v141_v61  ;;  %v149_v22 = vmul.f32 %v69_v5, %v69_v5  ;;  %v76_v24 = vld [vmem:[#allocation2 + $0x108] sm:$0xff]  ;;  %v77_v25 = vld [vmem:[#allocation2 + $0x110] sm:$0xff] }
  0x22   :  { %v150_v23 = vmul.f32 %v70_v6, %v70_v6  ;;  %195 = vadd.xlane.f32.xlu0 %v194_v7  ;;  %v217_v27 = vadd.f32 %v148_v16, %v147_v15  ;;  %v159_v28 = vmul.f32 %v79_v11, %v79_v11  ;;  %v160_v29 = vmul.f32 %v80_v12, %v80_v12  ;;  %v78_v30 = vld [vmem:[#allocation2 + $0x118] sm:$0xff]  ;;  %v87_v31 = vld [vmem:[#allocation2 + $0x160] sm:$0xff]  ;;  %v88_v32 = vld [vmem:[#allocation2 + $0x168] sm:$0xff] }
  0x23   :  { %v223_v26 = vadd.f32 %v222_v14, %v153_v10  ;;  %v209_v33 = vadd.f32 %v208_v21, %v142_v2  ;;  %v161_v34 = vmul.f32 %v81_v17, %v81_v17  ;;  %v162_v35 = vmul.f32 %v82_v18, %v82_v18  ;;  %v89_v37 = vld [vmem:[#allocation2 + $0x170] sm:$0xff]  ;;  %v83_v42 = vld [vmem:[#allocation2 + $0x140] sm:$0xff]  ;;  %v84_v43 = vld [vmem:[#allocation2 + $0x148] sm:$0xff] }
  0x24   :  { %v155_v36 = vmul.f32 %v75_v19, %v75_v19  ;;  %v218_v39 = vadd.f32 %v217_v27, %v149_v22  ;;  %v232_v40 = vadd.f32 %v160_v29, %v159_v28  ;;  %v156_v41 = vmul.f32 %v76_v24, %v76_v24  ;;  %v90_v46 = vld [vmem:[#allocation2 + $0x178] sm:$0xff]  ;;  %v85_v49 = vld [vmem:[#allocation2 + $0x150] sm:$0xff]  ;;  %v95_v54 = vld [vmem:[#allocation2 + $0x1a0] sm:$0xff] }
  0x25   :  { %v224_v38 = vadd.f32 %v223_v26, %v154_v13  ;;  %215 = vadd.xlane.f32.xlu1 %v214_v20  ;;  %v157_v44 = vmul.f32 %v77_v25, %v77_v25  ;;  %v158_v45 = vmul.f32 %v78_v30, %v78_v30  ;;  %v167_v47 = vmul.f32 %v87_v31, %v87_v31  ;;  %v96_v55 = vld [vmem:[#allocation2 + $0x1a8] sm:$0xff]  ;;  %v86_v57 = vld [vmem:[#allocation2 + $0x158] sm:$0xff]  ;;  %v97_v60 = vld [vmem:[#allocation2 + $0x1b0] sm:$0xff] }
  0x26   :  { %v168_v48 = vmul.f32 %v88_v32, %v88_v32  ;;  %210 = vadd.xlane.f32.xlu0 %v209_v33  ;;  %v219_v50 = vadd.f32 %v218_v39, %v150_v23  ;;  %v233_v51 = vadd.f32 %v232_v40, %v161_v34  ;;  %v227_v52 = vadd.f32 %v156_v41, %v155_v36  ;;  %v91_v61 = vld [vmem:[#allocation2 + $0x180] sm:$0xff]  ;;  %v98_v2 = vld [vmem:[#allocation2 + $0x1b8] sm:$0xff]  ;;  %v92_v3 = vld [vmem:[#allocation2 + $0x188] sm:$0xff] }
  0x27   :  { %v169_v53 = vmul.f32 %v89_v37, %v89_v37  ;;  %v163_v58 = vmul.f32 %v83_v42, %v83_v42  ;;  %v164_v59 = vmul.f32 %v84_v43, %v84_v43  ;;  %v170_v0 = vmul.f32 %v90_v46, %v90_v46  ;;  %v93_v8 = vld [vmem:[#allocation2 + $0x190] sm:$0xff]  ;;  %v103_v9 = vld [vmem:[#allocation2 + $0x1e0] sm:$0xff]  ;;  %v104_v10 = vld [vmem:[#allocation2 + $0x1e8] sm:$0xff] }
  0x28   :  { %v242_v56 = vadd.f32 %v168_v48, %v167_v47  ;;  %v234_v62 = vadd.f32 %v233_v51, %v162_v35  ;;  %v228_v63 = vadd.f32 %v227_v52, %v157_v44  ;;  %v165_v1 = vmul.f32 %v85_v49, %v85_v49  ;;  %v94_v14 = vld [vmem:[#allocation2 + $0x198] sm:$0xff]  ;;  %v105_v16 = vld [vmem:[#allocation2 + $0x1f0] sm:$0xff]  ;;  %v99_v21 = vld [vmem:[#allocation2 + $0x1c0] sm:$0xff] }
  0x29   :  { %225 = vadd.xlane.f32.xlu1 %v224_v38  ;;  %v237_v5 = vadd.f32 %v164_v59, %v163_v58  ;;  %v175_v6 = vmul.f32 %v95_v54, %v95_v54  ;;  %v176_v7 = vmul.f32 %v96_v55, %v96_v55  ;;  %v166_v12 = vmul.f32 %v86_v57, %v86_v57  ;;  %v100_v22 = vld [vmem:[#allocation2 + $0x1c8] sm:$0xff]  ;;  %v101_v27 = vld [vmem:[#allocation2 + $0x1d0] sm:$0xff]  ;;  %v106_v33 = vld [vmem:[#allocation2 + $0x1f8] sm:$0xff] }
  0x2a   :  { %v243_v4 = vadd.f32 %v242_v56, %v169_v53  ;;  %220 = vadd.xlane.f32.xlu0 %v219_v50  ;;  %v229_v11 = vadd.f32 %v228_v63, %v158_v45  ;;  %v177_v13 = vmul.f32 %v97_v60, %v97_v60  ;;  %v171_v15 = vmul.f32 %v91_v61, %v91_v61  ;;  %v102_v38 = vld [vmem:[#allocation2 + $0x1d8] sm:$0xff]  ;;  %v109_v49 = vld [vmem:[%s917_s1 + $0x10] sm:$0xff]  ;;  %v107_v50 = vld [vmem:[%s917_s1] sm:$0xff] }
  0x2b   :  { %v238_v17 = vadd.f32 %v237_v5, %v165_v1  ;;  %v178_v18 = vmul.f32 %v98_v2, %v98_v2  ;;  %v252_v19 = vadd.f32 %v176_v7, %v175_v6  ;;  %v172_v20 = vmul.f32 %v92_v3, %v92_v3  ;;  %v110_v55 = vld [vmem:[%s917_s1 + $0x18] sm:$0xff]  ;;  %v108_v56 = vld [vmem:[%s917_s1 + $0x8] sm:$0xff]  ;;  %v113_v6 = vld [vmem:[%s917_s1 + $0x30] sm:$0xff] }
  0x2c   :  { %v244_v23 = vadd.f32 %v243_v4, %v170_v0  ;;  %v173_v24 = vmul.f32 %v93_v8, %v93_v8  ;;  %v183_v25 = vmul.f32 %v103_v9, %v103_v9  ;;  %v184_v26 = vmul.f32 %v104_v10, %v104_v10  ;;  %v112_v61 = vld [vmem:[%s917_s1 + $0x28] sm:$0xff]  ;;  %v114_v4 = vld [vmem:[%s917_s1 + $0x38] sm:$0xff] }
  0x2d   :  { %235 = vadd.xlane.f32.xlu1 %v234_v62  ;;  %v253_v28 = vadd.f32 %v252_v19, %v177_v13  ;;  %v174_v29 = vmul.f32 %v94_v14, %v94_v14  ;;  %v247_v30 = vadd.f32 %v172_v20, %v171_v15  ;;  %v185_v31 = vmul.f32 %v105_v16, %v105_v16  ;;  %v111_v62 = vld [vmem:[%s917_s1 + $0x20] sm:$0xff]  ;;  %v118_v20 = vld [vmem:[%s917_s1 + $0x58] sm:$0xff] }
  0x2e   :  { %230 = vadd.xlane.f32.xlu0 %v229_v11  ;;  %v239_v32 = vadd.f32 %v238_v17, %v166_v12  ;;  %v262_v34 = vadd.f32 %v184_v26, %v183_v25  ;;  %v179_v35 = vmul.f32 %v99_v21, %v99_v21  ;;  %v180_v36 = vmul.f32 %v100_v22, %v100_v22  ;;  %v116_v12 = vld [vmem:[%s917_s1 + $0x48] sm:$0xff]  ;;  %v115_v14 = vld [vmem:[%s917_s1 + $0x40] sm:$0xff]  ;;  %v117_v22 = vld [vmem:[%s917_s1 + $0x50] sm:$0xff] }
  0x2f   :  { %v248_v37 = vadd.f32 %v247_v30, %v173_v24  ;;  %v181_v39 = vmul.f32 %v101_v27, %v101_v27  ;;  %v254_v41 = vadd.f32 %v253_v28, %v178_v18  ;;  %v186_v42 = vmul.f32 %v106_v33, %v106_v33 }
  0x30   :  { %v257_v40 = vadd.f32 %v180_v36, %v179_v35  ;;  %v263_v43 = vadd.f32 %v262_v34, %v185_v31  ;;  %v182_v45 = vmul.f32 %v102_v38, %v102_v38  ;;  %v120_v34 = vld [vmem:[%s917_s1 + $0x68] sm:$0xff]  ;;  %v119_v35 = vld [vmem:[%s917_s1 + $0x60] sm:$0xff] }
  0x31   :  { %245 = vadd.xlane.f32.xlu1 %v244_v23  ;;  %v249_v44 = vadd.f32 %v248_v37, %v174_v29 }
  0x32   :  { %240 = vadd.xlane.f32.xlu0 %v239_v32  ;;  %v258_v46 = vadd.f32 %v257_v40, %v181_v39  ;;  %v264_v47 = vadd.f32 %v263_v43, %v186_v42 }
  0x34   :  { %v259_v48 = vadd.f32 %v258_v46, %v182_v45 }
  0x35   :  { %255 = vadd.xlane.f32.xlu1 %v254_v41 }
  0x36   :  { %250 = vadd.xlane.f32.xlu0 %v249_v44 }
  0x39   :  { %265 = vadd.xlane.f32.xlu1 %v264_v47 }
  0x3a   :  { %260 = vadd.xlane.f32.xlu0 %v259_v48 }
  0xaa   :  { %v201_v51 = vpop.xlane.xlu1 %200 }
  0xab   :  { %v269_v52 = vadd.f32 %v201_v51, %v109_v49  ;;  %v191_v53 = vpop.xlane.xlu0 %190 }
  0xac   :  { %v267_v54 = vadd.f32 %v191_v53, %v107_v50  ;;  %v121_v53 = vld [vmem:[%s917_s1 + $0x70] sm:$0xff] }
  0xad   :  { %286 = vst.msk [vmem:[%s917_s1 + $0x10] sm:$0xff] %vm26_vm0, %v269_v52  ;;  %v122_v52 = vld [vmem:[%s917_s1 + $0x78] sm:$0xff] }
  0xae   :  { %284 = vst.msk [vmem:[%s917_s1] sm:$0xff] %vm26_vm0, %v267_v54  ;;  %v206_v57 = vpop.xlane.xlu1 %205 }
  0xaf   :  { %v270_v58 = vadd.f32 %v206_v57, %v110_v55  ;;  %v196_v59 = vpop.xlane.xlu0 %195 }
  0xb0   :  { %v268_v60 = vadd.f32 %v196_v59, %v108_v56 }
  0xb1   :  { %287 = vst.msk [vmem:[%s917_s1 + $0x18] sm:$0xff] %vm26_vm0, %v270_v58 }
  0xb2   :  { %285 = vst.msk [vmem:[%s917_s1 + $0x8] sm:$0xff] %vm26_vm0, %v268_v60  ;;  %v216_v63 = vpop.xlane.xlu1 %215 }
  0xb3   :  { %v272_v0 = vadd.f32 %v216_v63, %v112_v61  ;;  %v211_v1 = vpop.xlane.xlu0 %210 }
  0xb4   :  { %v305_v2 = vld [vmem:[%s917_s1 + $0x10] sm:$0xff]  ;;  %v271_v3 = vadd.f32 %v211_v1, %v111_v62 }
  0xb5   :  { %456 = vrsqrt.f32 %v305_v2  ;;  %v303_v5 = vld [vmem:[%s917_s1] sm:$0xff]  ;;  %289 = vst.msk [vmem:[%s917_s1 + $0x28] sm:$0xff] %vm26_vm0, %v272_v0  ;;  %vm335_vm1 = vcmp.eq.f32.partialorder %v305_v2, inf  ;;  %vm337_vm2 = vcmp.eq.f32.partialorder %v305_v2, 0.0  ;;  %v338_v31 = vand.u32 2147483648, %v305_v2 }
  0xb6   :  { %458 = vrsqrt.f32 %v303_v5  ;;  %288 = vst.msk [vmem:[%s917_s1 + $0x20] sm:$0xff] %vm26_vm0, %v271_v3  ;;  %v226_v7 = vpop.xlane.xlu1 %225  ;;  %vm321_vm3 = vcmp.eq.f32.partialorder %v303_v5, inf  ;;  %v324_v37 = vand.u32 2147483648, %v303_v5  ;;  %vm323_vm4 = vcmp.eq.f32.partialorder %v303_v5, 0.0 }
  0xb7   :  { %v274_v8 = vadd.f32 %v226_v7, %v114_v4  ;;  %v221_v9 = vpop.xlane.xlu0 %220 }
  0xb8   :  { %v659_v10 = vld [vmem:[%s917_s1 + $0x18] sm:$0xff]  ;;  %v273_v11 = vadd.f32 %v221_v9, %v113_v6 }
  0xb9   :  { %460 = vrsqrt.f32 %v659_v10  ;;  %v668_v13 = vld [vmem:[%s917_s1 + $0x8] sm:$0xff]  ;;  %291 = vst.msk [vmem:[%s917_s1 + $0x38] sm:$0xff] %vm26_vm0, %v274_v8  ;;  %vm342_vm5 = vcmp.eq.f32.partialorder %v659_v10, inf  ;;  %vm344_vm6 = vcmp.eq.f32.partialorder %v659_v10, 0.0  ;;  %v345_v49 = vand.u32 2147483648, %v659_v10 }
  0xba   :  { %462 = vrsqrt.f32 %v668_v13  ;;  %290 = vst.msk [vmem:[%s917_s1 + $0x30] sm:$0xff] %vm26_vm0, %v273_v11  ;;  %v236_v15 = vpop.xlane.xlu1 %235  ;;  %vm328_vm7 = vcmp.eq.f32.partialorder %v668_v13, inf  ;;  %v331_v55 = vand.u32 2147483648, %v668_v13  ;;  %vm330_vm8 = vcmp.eq.f32.partialorder %v668_v13, 0.0 }
  0xbb   :  { %v276_v16 = vadd.f32 %v236_v15, %v116_v12  ;;  %v231_v17 = vpop.xlane.xlu0 %230 }
  0xbc   :  { %v685_v18 = vld [vmem:[%s917_s1 + $0x28] sm:$0xff]  ;;  %v275_v19 = vadd.f32 %v231_v17, %v115_v14 }
  0xbd   :  { %464 = vrsqrt.f32 %v685_v18  ;;  %v694_v21 = vld [vmem:[%s917_s1 + $0x20] sm:$0xff]  ;;  %293 = vst.msk [vmem:[%s917_s1 + $0x48] sm:$0xff] %vm26_vm0, %v276_v16  ;;  %vm356_vm9 = vcmp.eq.f32.partialorder %v685_v18, inf  ;;  %vm358_vm10 = vcmp.eq.f32.partialorder %v685_v18, 0.0  ;;  %v359_v3 = vand.u32 2147483648, %v685_v18 }
  0xbe   :  { %466 = vrsqrt.f32 %v694_v21  ;;  %292 = vst.msk [vmem:[%s917_s1 + $0x40] sm:$0xff] %vm26_vm0, %v275_v19  ;;  %v246_v23 = vpop.xlane.xlu1 %245  ;;  %vm349_vm11 = vcmp.eq.f32.partialorder %v694_v21, inf  ;;  %v352_v7 = vand.u32 2147483648, %v694_v21  ;;  %vm351_vm12 = vcmp.eq.f32.partialorder %v694_v21, 0.0 }
  0xbf   :  { %v457_v24 = vpop.eup %456  ;;  %v278_v25 = vadd.f32 %v246_v23, %v118_v20  ;;  %v241_v26 = vpop.xlane.xlu0 %240 }
  0xc0   :  { %v459_v27 = vpop.eup %458  ;;  %v334_v28 = vmul.f32 %v457_v24, %v305_v2  ;;  %v711_v29 = vld [vmem:[%s917_s1 + $0x38] sm:$0xff]  ;;  %v277_v30 = vadd.f32 %v241_v26, %v117_v22 }
  0xc1   :  { %v320_v32 = vmul.f32 %v459_v27, %v303_v5  ;;  %468 = vrsqrt.f32 %v711_v29  ;;  %v717_v33 = vld [vmem:[%s917_s1 + $0x30] sm:$0xff]  ;;  %295 = vst.msk [vmem:[%s917_s1 + $0x58] sm:$0xff] %vm26_vm0, %v278_v25  ;;  %vm370_vm13 = vcmp.eq.f32.partialorder %v711_v29, inf  ;;  %vm372_vm14 = vcmp.eq.f32.partialorder %v711_v29, 0.0 }
  0xc2   :  { %v336_v36 = vsel %vm335_vm1, %v305_v2, %v334_v28  ;;  %470 = vrsqrt.f32 %v717_v33  ;;  %294 = vst.msk [vmem:[%s917_s1 + $0x50] sm:$0xff] %vm26_vm0, %v277_v30  ;;  %v256_v38 = vpop.xlane.xlu1 %255  ;;  %v373_v14 = vand.u32 2147483648, %v711_v29  ;;  %vm363_vm15 = vcmp.eq.f32.partialorder %v717_v33, inf }
  0xc3   :  { %v461_v39 = vpop.eup %460  ;;  %v339_v40 = vsel %vm337_vm2, %v338_v31, %v336_v36  ;;  %v322_v41 = vsel %vm321_vm3, %v303_v5, %v320_v32  ;;  %v251_v42 = vpop.xlane.xlu0 %250  ;;  %v280_v47 = vadd.f32 %v256_v38, %v120_v34  ;;  %v366_v19 = vand.u32 2147483648, %v717_v33 }
  0xc4   :  { %v463_v43 = vpop.eup %462  ;;  %433 = vst.msk [vmem:[%s917_s1 + $0x10] sm:$0xff] %vm26_vm0, %v339_v40  ;;  %v325_v44 = vsel %vm323_vm4, %v324_v37, %v322_v41  ;;  %v341_v45 = vmul.f32 %v461_v39, %v659_v10  ;;  %v743_v46 = vld [vmem:[%s917_s1 + $0x48] sm:$0xff]  ;;  %v279_v48 = vadd.f32 %v251_v42, %v119_v35  ;;  %vm365_vm1 = vcmp.eq.f32.partialorder %v717_v33, 0.0 }
  0xc5   :  { %431 = vst.msk [vmem:[%s917_s1] sm:$0xff] %vm26_vm0, %v325_v44  ;;  %v327_v50 = vmul.f32 %v463_v43, %v668_v13  ;;  %472 = vrsqrt.f32 %v743_v46  ;;  %v756_v51 = vld [vmem:[%s917_s1 + $0x40] sm:$0xff]  ;;  %297 = vst.msk [vmem:[%s917_s1 + $0x68] sm:$0xff] %vm26_vm0, %v280_v47  ;;  %vm384_vm2 = vcmp.eq.f32.partialorder %v743_v46, inf  ;;  %vm386_vm3 = vcmp.eq.f32.partialorder %v743_v46, 0.0 }
  0xc6   :  { %v343_v54 = vsel %vm342_vm5, %v659_v10, %v341_v45  ;;  %474 = vrsqrt.f32 %v756_v51  ;;  %296 = vst.msk [vmem:[%s917_s1 + $0x60] sm:$0xff] %vm26_vm0, %v279_v48  ;;  %v266_v56 = vpop.xlane.xlu1 %265  ;;  %v387_v26 = vand.u32 2147483648, %v743_v46  ;;  %vm377_vm4 = vcmp.eq.f32.partialorder %v756_v51, inf }
  0xc7   :  { %v465_v57 = vpop.eup %464  ;;  %v346_v58 = vsel %vm344_vm6, %v345_v49, %v343_v54  ;;  %v329_v59 = vsel %vm328_vm7, %v668_v13, %v327_v50  ;;  %v261_v60 = vpop.xlane.xlu0 %260  ;;  %v282_v1 = vadd.f32 %v266_v56, %v122_v52  ;;  %v380_v31 = vand.u32 2147483648, %v756_v51 }
  0xc8   :  { %v467_v61 = vpop.eup %466  ;;  %434 = vst.msk [vmem:[%s917_s1 + $0x18] sm:$0xff] %vm26_vm0, %v346_v58  ;;  %v332_v62 = vsel %vm330_vm8, %v331_v55, %v329_v59  ;;  %v355_v63 = vmul.f32 %v465_v57, %v685_v18  ;;  %v789_v0 = vld [vmem:[%s917_s1 + $0x58] sm:$0xff]  ;;  %v281_v2 = vadd.f32 %v261_v60, %v121_v53  ;;  %vm379_vm5 = vcmp.eq.f32.partialorder %v756_v51, 0.0 }
  0xc9   :  { %432 = vst.msk [vmem:[%s917_s1 + $0x8] sm:$0xff] %vm26_vm0, %v332_v62  ;;  %v348_v4 = vmul.f32 %v467_v61, %v694_v21  ;;  %476 = vrsqrt.f32 %v789_v0  ;;  %v802_v5 = vld [vmem:[%s917_s1 + $0x50] sm:$0xff]  ;;  %299 = vst.msk [vmem:[%s917_s1 + $0x78] sm:$0xff] %vm26_vm0, %v282_v1  ;;  %vm398_vm6 = vcmp.eq.f32.partialorder %v789_v0, inf  ;;  %v401_v38 = vand.u32 2147483648, %v789_v0 }
  0xca   :  { %v357_v6 = vsel %vm356_vm9, %v685_v18, %v355_v63  ;;  %478 = vrsqrt.f32 %v802_v5  ;;  %298 = vst.msk [vmem:[%s917_s1 + $0x70] sm:$0xff] %vm26_vm0, %v281_v2  ;;  %vm400_vm7 = vcmp.eq.f32.partialorder %v789_v0, 0.0  ;;  %vm391_vm8 = vcmp.eq.f32.partialorder %v802_v5, inf }
  0xcb   :  { %v469_v8 = vpop.eup %468  ;;  %v360_v9 = vsel %vm358_vm10, %v359_v3, %v357_v6  ;;  %v350_v10 = vsel %vm349_vm11, %v694_v21, %v348_v4  ;;  %v394_v41 = vand.u32 2147483648, %v802_v5  ;;  %vm393_vm9 = vcmp.eq.f32.partialorder %v802_v5, 0.0 }
  0xcc   :  { %v471_v11 = vpop.eup %470  ;;  %436 = vst.msk [vmem:[%s917_s1 + $0x28] sm:$0xff] %vm26_vm0, %v360_v9  ;;  %v353_v12 = vsel %vm351_vm12, %v352_v7, %v350_v10  ;;  %v369_v13 = vmul.f32 %v469_v8, %v711_v29  ;;  %v316_v16 = vld [vmem:[%s917_s1 + $0x68] sm:$0xff] }
  0xcd   :  { %435 = vst.msk [vmem:[%s917_s1 + $0x20] sm:$0xff] %vm26_vm0, %v353_v12  ;;  %v362_v15 = vmul.f32 %v471_v11, %v717_v33  ;;  %v837_v17 = vld [vmem:[%s917_s1 + $0x60] sm:$0xff]  ;;  %480 = vrsqrt.f32 %v316_v16  ;;  %vm412_vm10 = vcmp.eq.f32.partialorder %v316_v16, inf  ;;  %v415_v48 = vand.u32 2147483648, %v316_v16 }
  0xce   :  { %v371_v18 = vsel %vm370_vm13, %v711_v29, %v369_v13  ;;  %482 = vrsqrt.f32 %v837_v17  ;;  %vm414_vm11 = vcmp.eq.f32.partialorder %v316_v16, 0.0  ;;  %vm405_vm12 = vcmp.eq.f32.partialorder %v837_v17, inf }
  0xcf   :  { %v473_v20 = vpop.eup %472  ;;  %v374_v21 = vsel %vm372_vm14, %v373_v14, %v371_v18  ;;  %v364_v22 = vsel %vm363_vm15, %v717_v33, %v362_v15  ;;  %vm407_vm13 = vcmp.eq.f32.partialorder %v837_v17, 0.0 }
  0xd0   :  { %v475_v23 = vpop.eup %474  ;;  %438 = vst.msk [vmem:[%s917_s1 + $0x38] sm:$0xff] %vm26_vm0, %v374_v21  ;;  %v367_v24 = vsel %vm365_vm1, %v366_v19, %v364_v22  ;;  %v383_v25 = vmul.f32 %v473_v20, %v743_v46  ;;  %v318_v28 = vld [vmem:[%s917_s1 + $0x78] sm:$0xff] }
  0xd1   :  { %437 = vst.msk [vmem:[%s917_s1 + $0x30] sm:$0xff] %vm26_vm0, %v367_v24  ;;  %v376_v27 = vmul.f32 %v475_v23, %v756_v51  ;;  %v317_v29 = vld [vmem:[%s917_s1 + $0x70] sm:$0xff]  ;;  %484 = vrsqrt.f32 %v318_v28  ;;  %vm426_vm14 = vcmp.eq.f32.partialorder %v318_v28, inf  ;;  %v429_v58 = vand.u32 2147483648, %v318_v28 }
  0xd2   :  { %v385_v30 = vsel %vm384_vm2, %v743_v46, %v383_v25  ;;  %486 = vrsqrt.f32 %v317_v29  ;;  %vm428_vm15 = vcmp.eq.f32.partialorder %v318_v28, 0.0  ;;  %vm419_vm1 = vcmp.eq.f32.partialorder %v317_v29, inf }
  0xd3   :  { %v477_v32 = vpop.eup %476  ;;  %v388_v33 = vsel %vm386_vm3, %v387_v26, %v385_v30  ;;  %v378_v34 = vsel %vm377_vm4, %v756_v51, %v376_v27  ;;  %v408_v51 = vand.u32 2147483648, %v837_v17  ;;  %v422_v61 = vand.u32 2147483648, %v317_v29 }
  0xd4   :  { %v479_v35 = vpop.eup %478  ;;  %440 = vst.msk [vmem:[%s917_s1 + $0x48] sm:$0xff] %vm26_vm0, %v388_v33  ;;  %v381_v36 = vsel %vm379_vm5, %v380_v31, %v378_v34  ;;  %v397_v37 = vmul.f32 %v477_v32, %v789_v0  ;;  %vm421_vm2 = vcmp.eq.f32.partialorder %v317_v29, 0.0 }
  0xd5   :  { %439 = vst.msk [vmem:[%s917_s1 + $0x40] sm:$0xff] %vm26_vm0, %v381_v36  ;;  %v390_v39 = vmul.f32 %v479_v35, %v802_v5 }
  0xd6   :  { %v399_v40 = vsel %vm398_vm6, %v789_v0, %v397_v37 }
  0xd7   :  { %v402_v42 = vsel %vm400_vm7, %v401_v38, %v399_v40  ;;  %v392_v43 = vsel %vm391_vm8, %v802_v5, %v390_v39  ;;  %v481_v44 = vpop.eup %480 }
  0xd8   :  { %442 = vst.msk [vmem:[%s917_s1 + $0x58] sm:$0xff] %vm26_vm0, %v402_v42  ;;  %v395_v45 = vsel %vm393_vm9, %v394_v41, %v392_v43  ;;  %v483_v46 = vpop.eup %482  ;;  %v411_v47 = vmul.f32 %v481_v44, %v316_v16 }
  0xd9   :  { %441 = vst.msk [vmem:[%s917_s1 + $0x50] sm:$0xff] %vm26_vm0, %v395_v45  ;;  %v404_v49 = vmul.f32 %v483_v46, %v837_v17 }
  0xda   :  { %v413_v50 = vsel %vm412_vm10, %v316_v16, %v411_v47 }
  0xdb   :  { %v485_v52 = vpop.eup %484  ;;  %v416_v53 = vsel %vm414_vm11, %v415_v48, %v413_v50  ;;  %v406_v54 = vsel %vm405_vm12, %v837_v17, %v404_v49 }
  0xdc   :  { %v487_v55 = vpop.eup %486  ;;  %444 = vst.msk [vmem:[%s917_s1 + $0x68] sm:$0xff] %vm26_vm0, %v416_v53  ;;  %v409_v56 = vsel %vm407_vm13, %v408_v51, %v406_v54  ;;  %v425_v57 = vmul.f32 %v485_v52, %v318_v28 }
  0xdd   :  { %443 = vst.msk [vmem:[%s917_s1 + $0x60] sm:$0xff] %vm26_vm0, %v409_v56  ;;  %v418_v59 = vmul.f32 %v487_v55, %v317_v29 }
  0xde   :  { %v427_v60 = vsel %vm426_vm14, %v318_v28, %v425_v57 }
  0xdf   :  { %v430_v62 = vsel %vm428_vm15, %v429_v58, %v427_v60  ;;  %v420_v63 = vsel %vm419_vm1, %v317_v29, %v418_v59 }
  0xe0   :  { %446 = vst.msk [vmem:[%s917_s1 + $0x78] sm:$0xff] %vm26_vm0, %v430_v62  ;;  %v423_v0 = vsel %vm421_vm2, %v422_v61, %v420_v63 }
  0xe1   :  { %445 = vst.msk [vmem:[%s917_s1 + $0x70] sm:$0xff] %vm26_vm0, %v423_v0 }
  0xe2   :  { %451 = vsyncpa [#allocation3], 1 }

// kernel: virtual_softmax_logits.2
= control target key start
LH: loop header
LB: loop body
LE: loop exit
PB: predicated region body
PF: predicated region fallthrough
CT: control target
= control target key end

     0   :  { %7 = vsyncpa [#allocation3], 0  ;;  %s1141_s0 = inlined_call_operand.vmem [shape: f32[128,512], index: 0, kind: input, shape index: {}]   ;;  %s1142_s1 = inlined_call_operand.hbm [shape: f32[256,512], index: 1, kind: input, shape index: {}]   ;;  %s1143_s2 = inlined_call_operand.hbm [shape: f32[128,256], index: 2, kind: output, shape index: {}]  }
   0x1   :  { %8 = vsyncpa [#allocation4], 0  ;;  %s904_s9 = smov [#allocation2]   ;;  %s856_s13 = scalar_lea.hbm %s1142_s1, 16384 }
   0x2   :  { %s16_s10 = sshll.u32 %s904_s9, 4  ;;  %p857_p0 = scmp.ne.s32.totalorder %s1142_s1, %s856_s13  ;;  %s17_s10 = int_to_ptr.vmem [resolvable:$true] %s16_s10 }
   0x3   :  { %p860_p1 = scmp.lt.u32.totalorder %s856_s13, %s1142_s1 }
   0x5   :  { %p862_p2 = pnand %p860_p1, %p857_p0 }
   0x7   :  { %865 = shalt.err (!%p862_p2)
}
   0x8   :  { %s866_s18 = scalar_lea.vmem %s17_s10, 16384  ;;  %p871_p4 = scmp.lt.s32.totalorder %s17_s10, %s17_s10 }
   0x9   :  { %p867_p3 = scmp.ne.s32.totalorder %s17_s10, %s866_s18  ;;  %p872_p5 = scmp.lt.s32.totalorder %s866_s18, %s866_s18 }
   0xb   :  { %p873_p6 = por %p872_p5, %p871_p4 }
   0xd   :  { %p874_p7 = pnand %p873_p6, %p867_p3 }
   0xf   :  { %877 = shalt.err (!%p874_p7)
}
  0x10   :  { %s905_s19 = smov 512   ;;  %s906_s20 = smov 32  }
  0x11   :  { %22 = dma.hbm_to_vmem [thread:$0]  %s1142_s1, 16384, %s17_s10, [#allocation3], %s905_s19, %s905_s19, %s906_s20  }
  0x12   :  { %900 = dma.done.wait [#allocation3], 16384  }
  0x13   :  { %901 = vsyncadd [#allocation3], 4294950912  ;;  %v127_v0 = vld [vmem:[#allocation2 + $0x8] sm:$0xff]  ;;  %v129_v2 = vld [vmem:[#allocation2 + $0x18] sm:$0xff] }
  0x14   :  { %v131_v1 = vld [vmem:[#allocation2 + $0x28] sm:$0xff]  ;;  %v133_v4 = vld [vmem:[#allocation2 + $0x38] sm:$0xff]  ;;  %v126_v5 = vld [vmem:[#allocation2] sm:$0xff] }
  0x15   :  { %v689_v3 = vpack.c.bf16 %v131_v1, %v127_v0  ;;  %v130_v6 = vld [vmem:[#allocation2 + $0x20] sm:$0xff]  ;;  %v753_v7 = vpack.c.bf16 %v133_v4, %v129_v2  ;;  %v128_v9 = vld [vmem:[#allocation2 + $0x10] sm:$0xff]  ;;  %v135_v11 = vld [vmem:[#allocation2 + $0x48] sm:$0xff] }
  0x16   :  { %v691_v8 = vpack.c.bf16 %v130_v6, %v126_v5  ;;  %v132_v10 = vld [vmem:[#allocation2 + $0x30] sm:$0xff]  ;;  %v139_v13 = vld [vmem:[#allocation2 + $0x68] sm:$0xff]  ;;  %v137_v14 = vld [vmem:[#allocation2 + $0x58] sm:$0xff] }
  0x17   :  { %690 = vmatprep.subr.bf16.mxu1 %v689_v3  ;;  %v755_v12 = vpack.c.bf16 %v132_v10, %v128_v9  ;;  %v141_v15 = vld [vmem:[#allocation2 + $0x78] sm:$0xff]  ;;  %754 = vmatprep.subr.bf16.mxu0 %v753_v7  ;;  %v693_v16 = vpack.c.bf16 %v139_v13, %v135_v11  ;;  %v134_v18 = vld [vmem:[#allocation2 + $0x40] sm:$0xff]  ;;  %v136_v20 = vld [vmem:[#allocation2 + $0x50] sm:$0xff] }
  0x18   :  { %692 = vmatpush1.bf16.xpose.msra.mxu1 %v691_v8  ;;  %v757_v17 = vpack.c.bf16 %v141_v15, %v137_v14  ;;  %v138_v19 = vld [vmem:[#allocation2 + $0x60] sm:$0xff]  ;;  %v140_v21 = vld [vmem:[#allocation2 + $0x70] sm:$0xff]  ;;  %v143_v22 = vld [vmem:[#allocation2 + $0x88] sm:$0xff] }
  0x19   :  { %756 = vmatpush1.bf16.xpose.msra.mxu0 %v755_v12  ;;  %694 = vmatprep.subr.bf16.mxu1 %v693_v16  ;;  %v147_v23 = vld [vmem:[#allocation2 + $0xa8] sm:$0xff]  ;;  %v145_v24 = vld [vmem:[#allocation2 + $0x98] sm:$0xff]  ;;  %v695_v26 = vpack.c.bf16 %v138_v19, %v134_v18  ;;  %v759_v27 = vpack.c.bf16 %v140_v21, %v136_v20  ;;  %v142_v30 = vld [vmem:[#allocation2 + $0x80] sm:$0xff] }
  0x1a   :  { %758 = vmatprep.subr.bf16.mxu0 %v757_v17  ;;  %v149_v25 = vld [vmem:[#allocation2 + $0xb8] sm:$0xff]  ;;  %v697_v28 = vpack.c.bf16 %v147_v23, %v143_v22  ;;  %v146_v31 = vld [vmem:[#allocation2 + $0xa0] sm:$0xff]  ;;  %v144_v32 = vld [vmem:[#allocation2 + $0x90] sm:$0xff] }
  0x1b   :  { %v761_v29 = vpack.c.bf16 %v149_v25, %v145_v24  ;;  %v148_v33 = vld [vmem:[#allocation2 + $0xb0] sm:$0xff]  ;;  %v151_v34 = vld [vmem:[#allocation2 + $0xc8] sm:$0xff]  ;;  %v153_v36 = vld [vmem:[#allocation2 + $0xd8] sm:$0xff]  ;;  %v699_v38 = vpack.c.bf16 %v146_v31, %v142_v30 }
  0x1c   :  { %v155_v35 = vld [vmem:[#allocation2 + $0xe8] sm:$0xff]  ;;  %v157_v37 = vld [vmem:[#allocation2 + $0xf8] sm:$0xff]  ;;  %v763_v39 = vpack.c.bf16 %v148_v33, %v144_v32  ;;  %v150_v42 = vld [vmem:[#allocation2 + $0xc0] sm:$0xff] }
  0x1d   :  { %v701_v40 = vpack.c.bf16 %v155_v35, %v151_v34  ;;  %v765_v41 = vpack.c.bf16 %v157_v37, %v153_v36  ;;  %v154_v43 = vld [vmem:[#allocation2 + $0xe0] sm:$0xff]  ;;  %v152_v44 = vld [vmem:[#allocation2 + $0xd0] sm:$0xff]  ;;  %v159_v46 = vld [vmem:[#allocation2 + $0x108] sm:$0xff] }
  0x1e   :  { %v156_v45 = vld [vmem:[#allocation2 + $0xf0] sm:$0xff]  ;;  %v163_v47 = vld [vmem:[#allocation2 + $0x128] sm:$0xff]  ;;  %v161_v48 = vld [vmem:[#allocation2 + $0x118] sm:$0xff]  ;;  %v703_v50 = vpack.c.bf16 %v154_v43, %v150_v42 }
  0x1f   :  { %v165_v49 = vld [vmem:[#allocation2 + $0x138] sm:$0xff]  ;;  %v767_v51 = vpack.c.bf16 %v156_v45, %v152_v44  ;;  %v705_v52 = vpack.c.bf16 %v163_v47, %v159_v46  ;;  %v158_v54 = vld [vmem:[#allocation2 + $0x100] sm:$0xff]  ;;  %v160_v56 = vld [vmem:[#allocation2 + $0x110] sm:$0xff] }
  0x20   :  { %696 = vmatpush1.bf16.xpose.msra.mxu1 %v695_v26  ;;  %v769_v53 = vpack.c.bf16 %v165_v49, %v161_v48  ;;  %v162_v55 = vld [vmem:[#allocation2 + $0x120] sm:$0xff]  ;;  %v164_v57 = vld [vmem:[#allocation2 + $0x130] sm:$0xff]  ;;  %v167_v58 = vld [vmem:[#allocation2 + $0x148] sm:$0xff] }
  0x21   :  { %760 = vmatpush1.bf16.xpose.msra.mxu0 %v759_v27  ;;  %698 = vmatprep.subr.bf16.mxu1 %v697_v28  ;;  %v171_v59 = vld [vmem:[#allocation2 + $0x168] sm:$0xff]  ;;  %v169_v60 = vld [vmem:[#allocation2 + $0x158] sm:$0xff]  ;;  %v707_v62 = vpack.c.bf16 %v162_v55, %v158_v54  ;;  %v771_v63 = vpack.c.bf16 %v164_v57, %v160_v56  ;;  %v166_v2 = vld [vmem:[#allocation2 + $0x140] sm:$0xff] }
  0x22   :  { %762 = vmatprep.subr.bf16.mxu0 %v761_v29  ;;  %v173_v61 = vld [vmem:[#allocation2 + $0x178] sm:$0xff]  ;;  %v709_v0 = vpack.c.bf16 %v171_v59, %v167_v58  ;;  %v170_v3 = vld [vmem:[#allocation2 + $0x160] sm:$0xff]  ;;  %v168_v4 = vld [vmem:[#allocation2 + $0x150] sm:$0xff] }
  0x23   :  { %v773_v1 = vpack.c.bf16 %v173_v61, %v169_v60  ;;  %v172_v5 = vld [vmem:[#allocation2 + $0x170] sm:$0xff]  ;;  %v175_v6 = vld [vmem:[#allocation2 + $0x188] sm:$0xff]  ;;  %v177_v8 = vld [vmem:[#allocation2 + $0x198] sm:$0xff]  ;;  %v711_v10 = vpack.c.bf16 %v170_v3, %v166_v2 }
  0x24   :  { %v179_v7 = vld [vmem:[#allocation2 + $0x1a8] sm:$0xff]  ;;  %v181_v9 = vld [vmem:[#allocation2 + $0x1b8] sm:$0xff]  ;;  %v775_v11 = vpack.c.bf16 %v172_v5, %v168_v4  ;;  %v174_v16 = vld [vmem:[#allocation2 + $0x180] sm:$0xff] }
  0x25   :  { %v713_v12 = vpack.c.bf16 %v179_v7, %v175_v6  ;;  %v777_v13 = vpack.c.bf16 %v181_v9, %v177_v8  ;;  %v63_v14 = vld [vmem:[%s1141_s0 + $0x8] sm:$0xff]  ;;  %v65_v15 = vld [vmem:[%s1141_s0 + $0x18] sm:$0xff]  ;;  %v178_v17 = vld [vmem:[#allocation2 + $0x1a0] sm:$0xff] }
  0x26   :  { %350 = vmatprep.mubr.f32.mxu1 %v63_v14  ;;  %511 = vmatprep.mubr.f32.mxu0 %v65_v15  ;;  %v176_v18 = vld [vmem:[#allocation2 + $0x190] sm:$0xff]  ;;  %v183_v20 = vld [vmem:[#allocation2 + $0x1c8] sm:$0xff]  ;;  %v185_v22 = vld [vmem:[#allocation2 + $0x1d8] sm:$0xff]  ;;  %v715_v24 = vpack.c.bf16 %v178_v17, %v174_v16 }
  0x27   :  { %v180_v19 = vld [vmem:[#allocation2 + $0x1b0] sm:$0xff]  ;;  %v187_v21 = vld [vmem:[#allocation2 + $0x1e8] sm:$0xff]  ;;  %v189_v23 = vld [vmem:[#allocation2 + $0x1f8] sm:$0xff] }
  0x28   :  { %700 = vmatpush1.bf16.xpose.msra.mxu1 %v699_v38  ;;  %v779_v25 = vpack.c.bf16 %v180_v19, %v176_v18  ;;  %v717_v26 = vpack.c.bf16 %v187_v21, %v183_v20  ;;  %v781_v27 = vpack.c.bf16 %v189_v23, %v185_v22  ;;  %v182_v28 = vld [vmem:[#allocation2 + $0x1c0] sm:$0xff]  ;;  %v184_v30 = vld [vmem:[#allocation2 + $0x1d0] sm:$0xff]  ;;  %v191_v32 = vld [vmem:[#allocation2 + $0x208] sm:$0xff] }
  0x29   :  { %764 = vmatpush1.bf16.xpose.msra.mxu0 %v763_v39  ;;  %702 = vmatprep.subr.bf16.mxu1 %v701_v40  ;;  %v186_v29 = vld [vmem:[#allocation2 + $0x1e0] sm:$0xff]  ;;  %v188_v31 = vld [vmem:[#allocation2 + $0x1f0] sm:$0xff]  ;;  %v195_v33 = vld [vmem:[#allocation2 + $0x228] sm:$0xff] }
  0x2a   :  { %766 = vmatprep.subr.bf16.mxu0 %v765_v41  ;;  %v193_v34 = vld [vmem:[#allocation2 + $0x218] sm:$0xff]  ;;  %v719_v36 = vpack.c.bf16 %v186_v29, %v182_v28  ;;  %v783_v37 = vpack.c.bf16 %v188_v31, %v184_v30  ;;  %v721_v38 = vpack.c.bf16 %v195_v33, %v191_v32  ;;  %v190_v40 = vld [vmem:[#allocation2 + $0x200] sm:$0xff]  ;;  %v192_v42 = vld [vmem:[#allocation2 + $0x210] sm:$0xff] }
  0x2b   :  { %v197_v35 = vld [vmem:[#allocation2 + $0x238] sm:$0xff]  ;;  %v194_v41 = vld [vmem:[#allocation2 + $0x220] sm:$0xff]  ;;  %v196_v43 = vld [vmem:[#allocation2 + $0x230] sm:$0xff] }
  0x2c   :  { %v785_v39 = vpack.c.bf16 %v197_v35, %v193_v34  ;;  %v199_v44 = vld [vmem:[#allocation2 + $0x248] sm:$0xff]  ;;  %v201_v46 = vld [vmem:[#allocation2 + $0x258] sm:$0xff]  ;;  %v723_v48 = vpack.c.bf16 %v194_v41, %v190_v40  ;;  %v787_v49 = vpack.c.bf16 %v196_v43, %v192_v42  ;;  %v200_v54 = vld [vmem:[#allocation2 + $0x250] sm:$0xff] }
  0x2d   :  { %v203_v45 = vld [vmem:[#allocation2 + $0x268] sm:$0xff]  ;;  %v205_v47 = vld [vmem:[#allocation2 + $0x278] sm:$0xff]  ;;  %v204_v55 = vld [vmem:[#allocation2 + $0x270] sm:$0xff] }
  0x2e   :  { %v207_v56 = vld [vmem:[#allocation2 + $0x288] sm:$0xff]  ;;  %v209_v58 = vld [vmem:[#allocation2 + $0x298] sm:$0xff]  ;;  %v791_v61 = vpack.c.bf16 %v204_v55, %v200_v54  ;;  %v208_v2 = vld [vmem:[#allocation2 + $0x290] sm:$0xff] }
  0x2f   :  { %v211_v57 = vld [vmem:[#allocation2 + $0x2a8] sm:$0xff]  ;;  %v213_v59 = vld [vmem:[#allocation2 + $0x2b8] sm:$0xff]  ;;  %v212_v3 = vld [vmem:[#allocation2 + $0x2b0] sm:$0xff] }
  0x30   :  { %704 = vmatpush1.bf16.xpose.msra.mxu1 %v703_v50  ;;  %v725_v50 = vpack.c.bf16 %v203_v45, %v199_v44  ;;  %v215_v4 = vld [vmem:[#allocation2 + $0x2c8] sm:$0xff]  ;;  %v217_v6 = vld [vmem:[#allocation2 + $0x2d8] sm:$0xff]  ;;  %v795_v9 = vpack.c.bf16 %v212_v3, %v208_v2  ;;  %v216_v14 = vld [vmem:[#allocation2 + $0x2d0] sm:$0xff] }
  0x31   :  { %768 = vmatpush1.bf16.xpose.msra.mxu0 %v767_v51  ;;  %706 = vmatprep.subr.bf16.mxu1 %v705_v52  ;;  %v789_v51 = vpack.c.bf16 %v205_v47, %v201_v46  ;;  %v198_v52 = vld [vmem:[#allocation2 + $0x240] sm:$0xff]  ;;  %v219_v5 = vld [vmem:[#allocation2 + $0x2e8] sm:$0xff]  ;;  %v221_v7 = vld [vmem:[#allocation2 + $0x2f8] sm:$0xff] }
  0x32   :  { %770 = vmatprep.subr.bf16.mxu0 %v769_v53  ;;  %v202_v53 = vld [vmem:[#allocation2 + $0x260] sm:$0xff]  ;;  %v220_v15 = vld [vmem:[#allocation2 + $0x2f0] sm:$0xff]  ;;  %v223_v16 = vld [vmem:[#allocation2 + $0x308] sm:$0xff] }
  0x33   :  { %v727_v60 = vpack.c.bf16 %v202_v53, %v198_v52  ;;  %v227_v17 = vld [vmem:[#allocation2 + $0x328] sm:$0xff]  ;;  %v225_v18 = vld [vmem:[#allocation2 + $0x318] sm:$0xff]  ;;  %v799_v21 = vpack.c.bf16 %v220_v15, %v216_v14  ;;  %v62_v2 = vld [vmem:[%s1141_s0] sm:$0xff] }
  0x34   :  { %v229_v19 = vld [vmem:[#allocation2 + $0x338] sm:$0xff]  ;;  %v737_v22 = vpack.c.bf16 %v227_v17, %v223_v16  ;;  %v231_v28 = vld [vmem:[#allocation2 + $0x348] sm:$0xff]  ;;  %v64_v3 = vld [vmem:[%s1141_s0 + $0x10] sm:$0xff] }
  0x35   :  { %v801_v23 = vpack.c.bf16 %v229_v19, %v225_v18  ;;  %v235_v29 = vld [vmem:[#allocation2 + $0x368] sm:$0xff]  ;;  %v233_v30 = vld [vmem:[#allocation2 + $0x358] sm:$0xff]  ;;  %v74_v14 = vld [vmem:[%s1141_s0 + $0x60] sm:$0xff] }
  0x36   :  { %v237_v31 = vld [vmem:[#allocation2 + $0x378] sm:$0xff]  ;;  %v741_v34 = vpack.c.bf16 %v235_v29, %v231_v28  ;;  %v239_v40 = vld [vmem:[#allocation2 + $0x388] sm:$0xff]  ;;  %v76_v15 = vld [vmem:[%s1141_s0 + $0x70] sm:$0xff] }
  0x37   :  { %v805_v35 = vpack.c.bf16 %v237_v31, %v233_v30  ;;  %v243_v41 = vld [vmem:[#allocation2 + $0x3a8] sm:$0xff]  ;;  %v241_v42 = vld [vmem:[#allocation2 + $0x398] sm:$0xff]  ;;  %v78_v18 = vld [vmem:[%s1141_s0 + $0x80] sm:$0xff] }
  0x38   :  { %708 = vmatpush1.bf16.xpose.msra.mxu1 %v707_v62  ;;  %v729_v62 = vpack.c.bf16 %v211_v57, %v207_v56  ;;  %v245_v43 = vld [vmem:[#allocation2 + $0x3b8] sm:$0xff]  ;;  %v745_v46 = vpack.c.bf16 %v243_v41, %v239_v40  ;;  %v247_v52 = vld [vmem:[#allocation2 + $0x3c8] sm:$0xff]  ;;  %v80_v19 = vld [vmem:[%s1141_s0 + $0x90] sm:$0xff] }
  0x39   :  { %772 = vmatpush1.bf16.xpose.msra.mxu0 %v771_v63  ;;  %710 = vmatprep.subr.bf16.mxu1 %v709_v0  ;;  %v793_v63 = vpack.c.bf16 %v213_v59, %v209_v58  ;;  %v206_v0 = vld [vmem:[#allocation2 + $0x280] sm:$0xff]  ;;  %v809_v47 = vpack.c.bf16 %v245_v43, %v241_v42  ;;  %v251_v53 = vld [vmem:[#allocation2 + $0x3e8] sm:$0xff]  ;;  %v249_v54 = vld [vmem:[#allocation2 + $0x3d8] sm:$0xff] }
  0x3a   :  { %774 = vmatprep.subr.bf16.mxu0 %v773_v1  ;;  %v210_v1 = vld [vmem:[#allocation2 + $0x2a0] sm:$0xff]  ;;  %v253_v55 = vld [vmem:[#allocation2 + $0x3f8] sm:$0xff]  ;;  %v749_v58 = vpack.c.bf16 %v251_v53, %v247_v52  ;;  %v79_v16 = vld [vmem:[%s1141_s0 + $0x88] sm:$0xff] }
  0x3b   :  { %v731_v8 = vpack.c.bf16 %v210_v1, %v206_v0  ;;  %v813_v59 = vpack.c.bf16 %v253_v55, %v249_v54  ;;  %v81_v17 = vld [vmem:[%s1141_s0 + $0x98] sm:$0xff]  ;;  %v91_v28 = vld [vmem:[%s1141_s0 + $0xe8] sm:$0xff]  ;;  %v90_v30 = vld [vmem:[%s1141_s0 + $0xe0] sm:$0xff] }
  0x3c   :  { %v93_v29 = vld [vmem:[%s1141_s0 + $0xf8] sm:$0xff]  ;;  %v92_v31 = vld [vmem:[%s1141_s0 + $0xf0] sm:$0xff]  ;;  %v103_v40 = vld [vmem:[%s1141_s0 + $0x148] sm:$0xff] }
  0x3d   :  { %v105_v41 = vld [vmem:[%s1141_s0 + $0x158] sm:$0xff]  ;;  %v102_v42 = vld [vmem:[%s1141_s0 + $0x140] sm:$0xff]  ;;  %v104_v43 = vld [vmem:[%s1141_s0 + $0x150] sm:$0xff] }
  0x3e   :  { %v115_v52 = vld [vmem:[%s1141_s0 + $0x1a8] sm:$0xff]  ;;  %v117_v53 = vld [vmem:[%s1141_s0 + $0x1b8] sm:$0xff]  ;;  %v114_v54 = vld [vmem:[%s1141_s0 + $0x1a0] sm:$0xff] }
  0x3f   :  { %v116_v55 = vld [vmem:[%s1141_s0 + $0x1b0] sm:$0xff] }
  0x40   :  { %712 = vmatpush1.bf16.xpose.msra.mxu1 %v711_v10  ;;  %v733_v10 = vpack.c.bf16 %v219_v5, %v215_v4  ;;  %v67_v4 = vld [vmem:[%s1141_s0 + $0x28] sm:$0xff]  ;;  %v69_v5 = vld [vmem:[%s1141_s0 + $0x38] sm:$0xff] }
  0x41   :  { %776 = vmatpush1.bf16.xpose.msra.mxu0 %v775_v11  ;;  %714 = vmatprep.subr.bf16.mxu1 %v713_v12  ;;  %v797_v11 = vpack.c.bf16 %v221_v7, %v217_v6  ;;  %v214_v12 = vld [vmem:[#allocation2 + $0x2c0] sm:$0xff]  ;;  %v68_v7 = vld [vmem:[%s1141_s0 + $0x30] sm:$0xff] }
  0x42   :  { %778 = vmatprep.subr.bf16.mxu0 %v777_v13  ;;  %v218_v13 = vld [vmem:[#allocation2 + $0x2e0] sm:$0xff] }
  0x43   :  { %v735_v20 = vpack.c.bf16 %v218_v13, %v214_v12  ;;  %v66_v6 = vld [vmem:[%s1141_s0 + $0x20] sm:$0xff]  ;;  %v75_v12 = vld [vmem:[%s1141_s0 + $0x68] sm:$0xff]  ;;  %v77_v13 = vld [vmem:[%s1141_s0 + $0x78] sm:$0xff] }
  0x48   :  { %716 = vmatpush1.bf16.xpose.msra.mxu1 %v715_v24  ;;  %v222_v24 = vld [vmem:[#allocation2 + $0x300] sm:$0xff] }
  0x49   :  { %780 = vmatpush1.bf16.xpose.msra.mxu0 %v779_v25  ;;  %718 = vmatprep.subr.bf16.mxu1 %v717_v26  ;;  %v226_v25 = vld [vmem:[#allocation2 + $0x320] sm:$0xff]  ;;  %v224_v26 = vld [vmem:[#allocation2 + $0x310] sm:$0xff] }
  0x4a   :  { %782 = vmatprep.subr.bf16.mxu0 %v781_v27  ;;  %v228_v27 = vld [vmem:[#allocation2 + $0x330] sm:$0xff]  ;;  %v739_v32 = vpack.c.bf16 %v226_v25, %v222_v24  ;;  %v87_v24 = vld [vmem:[%s1141_s0 + $0xc8] sm:$0xff]  ;;  %v89_v25 = vld [vmem:[%s1141_s0 + $0xd8] sm:$0xff] }
  0x4b   :  { %v803_v33 = vpack.c.bf16 %v228_v27, %v224_v26  ;;  %v86_v26 = vld [vmem:[%s1141_s0 + $0xc0] sm:$0xff]  ;;  %v88_v27 = vld [vmem:[%s1141_s0 + $0xd0] sm:$0xff] }
  0x50   :  { %720 = vmatpush1.bf16.xpose.msra.mxu1 %v719_v36  ;;  %v230_v36 = vld [vmem:[#allocation2 + $0x340] sm:$0xff] }
  0x51   :  { %784 = vmatpush1.bf16.xpose.msra.mxu0 %v783_v37  ;;  %722 = vmatprep.subr.bf16.mxu1 %v721_v38  ;;  %v234_v37 = vld [vmem:[#allocation2 + $0x360] sm:$0xff]  ;;  %v232_v38 = vld [vmem:[#allocation2 + $0x350] sm:$0xff] }
  0x52   :  { %786 = vmatprep.subr.bf16.mxu0 %v785_v39  ;;  %v236_v39 = vld [vmem:[#allocation2 + $0x370] sm:$0xff]  ;;  %v743_v44 = vpack.c.bf16 %v234_v37, %v230_v36  ;;  %v99_v36 = vld [vmem:[%s1141_s0 + $0x128] sm:$0xff]  ;;  %v101_v37 = vld [vmem:[%s1141_s0 + $0x138] sm:$0xff] }
  0x53   :  { %v807_v45 = vpack.c.bf16 %v236_v39, %v232_v38  ;;  %v98_v38 = vld [vmem:[%s1141_s0 + $0x120] sm:$0xff]  ;;  %v100_v39 = vld [vmem:[%s1141_s0 + $0x130] sm:$0xff] }
  0x58   :  { %724 = vmatpush1.bf16.xpose.msra.mxu1 %v723_v48  ;;  %v238_v48 = vld [vmem:[#allocation2 + $0x380] sm:$0xff] }
  0x59   :  { %788 = vmatpush1.bf16.xpose.msra.mxu0 %v787_v49  ;;  %726 = vmatprep.subr.bf16.mxu1 %v725_v50  ;;  %v242_v49 = vld [vmem:[#allocation2 + $0x3a0] sm:$0xff]  ;;  %v240_v50 = vld [vmem:[#allocation2 + $0x390] sm:$0xff] }
  0x5a   :  { %790 = vmatprep.subr.bf16.mxu0 %v789_v51  ;;  %v244_v51 = vld [vmem:[#allocation2 + $0x3b0] sm:$0xff]  ;;  %v747_v56 = vpack.c.bf16 %v242_v49, %v238_v48  ;;  %v111_v48 = vld [vmem:[%s1141_s0 + $0x188] sm:$0xff]  ;;  %v113_v49 = vld [vmem:[%s1141_s0 + $0x198] sm:$0xff] }
  0x5b   :  { %v811_v57 = vpack.c.bf16 %v244_v51, %v240_v50  ;;  %v110_v50 = vld [vmem:[%s1141_s0 + $0x180] sm:$0xff]  ;;  %v112_v51 = vld [vmem:[%s1141_s0 + $0x190] sm:$0xff] }
  0x60   :  { %728 = vmatpush1.bf16.xpose.msra.mxu1 %v727_v60  ;;  %v246_v60 = vld [vmem:[#allocation2 + $0x3c0] sm:$0xff] }
  0x61   :  { %792 = vmatpush1.bf16.xpose.msra.mxu0 %v791_v61  ;;  %730 = vmatprep.subr.bf16.mxu1 %v729_v62  ;;  %v250_v61 = vld [vmem:[#allocation2 + $0x3e0] sm:$0xff]  ;;  %v248_v62 = vld [vmem:[#allocation2 + $0x3d0] sm:$0xff] }
  0x62   :  { %794 = vmatprep.subr.bf16.mxu0 %v793_v63  ;;  %v252_v63 = vld [vmem:[#allocation2 + $0x3f0] sm:$0xff]  ;;  %v751_v0 = vpack.c.bf16 %v250_v61, %v246_v60  ;;  %v123_v60 = vld [vmem:[%s1141_s0 + $0x1e8] sm:$0xff]  ;;  %v125_v61 = vld [vmem:[%s1141_s0 + $0x1f8] sm:$0xff] }
  0x63   :  { %v815_v1 = vpack.c.bf16 %v252_v63, %v248_v62  ;;  %v122_v62 = vld [vmem:[%s1141_s0 + $0x1e0] sm:$0xff]  ;;  %v124_v63 = vld [vmem:[%s1141_s0 + $0x1f0] sm:$0xff] }
  0x68   :  { %732 = vmatpush1.bf16.xpose.msra.mxu1 %v731_v8  ;;  %v71_v8 = vld [vmem:[%s1141_s0 + $0x48] sm:$0xff] }
  0x69   :  { %796 = vmatpush1.bf16.xpose.msra.mxu0 %v795_v9  ;;  %734 = vmatprep.subr.bf16.mxu1 %v733_v10  ;;  %v73_v9 = vld [vmem:[%s1141_s0 + $0x58] sm:$0xff]  ;;  %v70_v10 = vld [vmem:[%s1141_s0 + $0x40] sm:$0xff] }
  0x6a   :  { %798 = vmatprep.subr.bf16.mxu0 %v797_v11  ;;  %v72_v11 = vld [vmem:[%s1141_s0 + $0x50] sm:$0xff] }
  0x70   :  { %736 = vmatpush1.bf16.xpose.msra.mxu1 %v735_v20  ;;  %v83_v20 = vld [vmem:[%s1141_s0 + $0xa8] sm:$0xff] }
  0x71   :  { %800 = vmatpush1.bf16.xpose.msra.mxu0 %v799_v21  ;;  %738 = vmatprep.subr.bf16.mxu1 %v737_v22  ;;  %v85_v21 = vld [vmem:[%s1141_s0 + $0xb8] sm:$0xff]  ;;  %v82_v22 = vld [vmem:[%s1141_s0 + $0xa0] sm:$0xff] }
  0x72   :  { %802 = vmatprep.subr.bf16.mxu0 %v801_v23  ;;  %v84_v23 = vld [vmem:[%s1141_s0 + $0xb0] sm:$0xff] }
  0x78   :  { %740 = vmatpush1.bf16.xpose.msra.mxu1 %v739_v32  ;;  %v95_v32 = vld [vmem:[%s1141_s0 + $0x108] sm:$0xff] }
  0x79   :  { %804 = vmatpush1.bf16.xpose.msra.mxu0 %v803_v33  ;;  %742 = vmatprep.subr.bf16.mxu1 %v741_v34  ;;  %v97_v33 = vld [vmem:[%s1141_s0 + $0x118] sm:$0xff]  ;;  %v94_v34 = vld [vmem:[%s1141_s0 + $0x100] sm:$0xff] }
  0x7a   :  { %806 = vmatprep.subr.bf16.mxu0 %v805_v35  ;;  %v96_v35 = vld [vmem:[%s1141_s0 + $0x110] sm:$0xff] }
  0x80   :  { %744 = vmatpush1.bf16.xpose.msra.mxu1 %v743_v44  ;;  %v107_v44 = vld [vmem:[%s1141_s0 + $0x168] sm:$0xff] }
  0x81   :  { %808 = vmatpush1.bf16.xpose.msra.mxu0 %v807_v45  ;;  %746 = vmatprep.subr.bf16.mxu1 %v745_v46  ;;  %v109_v45 = vld [vmem:[%s1141_s0 + $0x178] sm:$0xff]  ;;  %v106_v46 = vld [vmem:[%s1141_s0 + $0x160] sm:$0xff] }
  0x82   :  { %810 = vmatprep.subr.bf16.mxu0 %v809_v47  ;;  %v108_v47 = vld [vmem:[%s1141_s0 + $0x170] sm:$0xff] }
  0x88   :  { %748 = vmatpush1.bf16.xpose.msra.mxu1 %v747_v56  ;;  %v119_v56 = vld [vmem:[%s1141_s0 + $0x1c8] sm:$0xff] }
  0x89   :  { %812 = vmatpush1.bf16.xpose.msra.mxu0 %v811_v57  ;;  %750 = vmatprep.subr.bf16.mxu1 %v749_v58  ;;  %v121_v57 = vld [vmem:[%s1141_s0 + $0x1d8] sm:$0xff]  ;;  %v118_v58 = vld [vmem:[%s1141_s0 + $0x1c0] sm:$0xff] }
  0x8a   :  { %814 = vmatprep.subr.bf16.mxu0 %v813_v59  ;;  %v120_v59 = vld [vmem:[%s1141_s0 + $0x1d0] sm:$0xff]  ;;  %s907_s0 = smov [#allocation5]  }
  0x8b   :  { %s677_s6 = sshll.u32 %s907_s0, 4  ;;  %s678_s6 = int_to_ptr.vmem [resolvable:$true] %s677_s6 }
  0x8c   :  { %s878_s7 = scalar_lea.vmem %s678_s6, 4096  ;;  %p883_p9 = scmp.lt.s32.totalorder %s678_s6, %s678_s6 }
  0x8d   :  { %p879_p8 = scmp.ne.s32.totalorder %s678_s6, %s878_s7  ;;  %p884_p10 = scmp.lt.s32.totalorder %s878_s7, %s878_s7 }
  0x8f   :  { %p885_p11 = por %p884_p10, %p883_p9 }
  0x90   :  { %752 = vmatpush1.bf16.xpose.msra.mxu1 %v751_v0 }
  0x91   :  { %816 = vmatpush1.bf16.xpose.msra.mxu0 %v815_v1  ;;  %p886_p12 = pnand %p885_p11, %p879_p8 }
  0x97   :  { %351 = vmatmul.mubr.f32.vlgmr.msra.gmra.mrb[0].mxu1 %v62_v2 }
  0x98   :  { %512 = vmatmul.mubr.f32.vlgmr.msra.gmra.mrb[0].mxu0 %v64_v3  ;;  %356 = vmatprep.mubr.f32.mxu1 %v67_v4 }
  0x99   :  { %517 = vmatprep.mubr.f32.mxu0 %v69_v5 }
  0x9b   :  { %357 = vmatmul.mubr.f32.gmra.mrb[2].mxu1 %v66_v6 }
  0x9c   :  { %518 = vmatmul.mubr.f32.gmra.mrb[2].mxu0 %v68_v7  ;;  %362 = vmatprep.mubr.f32.mxu1 %v71_v8 }
  0x9d   :  { %523 = vmatprep.mubr.f32.mxu0 %v73_v9 }
  0x9f   :  { %363 = vmatmul.mubr.f32.gmra.mrb[4].mxu1 %v70_v10 }
  0xa0   :  { %524 = vmatmul.mubr.f32.gmra.mrb[4].mxu0 %v72_v11  ;;  %368 = vmatprep.mubr.f32.mxu1 %v75_v12 }
  0xa1   :  { %529 = vmatprep.mubr.f32.mxu0 %v77_v13 }
  0xa3   :  { %369 = vmatmul.mubr.f32.gmra.mrb[6].mxu1 %v74_v14 }
  0xa4   :  { %530 = vmatmul.mubr.f32.gmra.mrb[6].mxu0 %v76_v15  ;;  %374 = vmatprep.mubr.f32.mxu1 %v79_v16 }
  0xa5   :  { %535 = vmatprep.mubr.f32.mxu0 %v81_v17 }
  0xa7   :  { %375 = vmatmul.mubr.f32.gmra.mrb[8].mxu1 %v78_v18 }
  0xa8   :  { %536 = vmatmul.mubr.f32.gmra.mrb[8].mxu0 %v80_v19  ;;  %380 = vmatprep.mubr.f32.mxu1 %v83_v20 }
  0xa9   :  { %541 = vmatprep.mubr.f32.mxu0 %v85_v21 }
  0xab   :  { %381 = vmatmul.mubr.f32.gmra.mrb[10].mxu1 %v82_v22 }
  0xac   :  { %542 = vmatmul.mubr.f32.gmra.mrb[10].mxu0 %v84_v23  ;;  %386 = vmatprep.mubr.f32.mxu1 %v87_v24 }
  0xad   :  { %547 = vmatprep.mubr.f32.mxu0 %v89_v25 }
  0xaf   :  { %387 = vmatmul.mubr.f32.gmra.mrb[12].mxu1 %v86_v26 }
  0xb0   :  { %548 = vmatmul.mubr.f32.gmra.mrb[12].mxu0 %v88_v27  ;;  %392 = vmatprep.mubr.f32.mxu1 %v91_v28 }
  0xb1   :  { %553 = vmatprep.mubr.f32.mxu0 %v93_v29 }
  0xb3   :  { %393 = vmatmul.mubr.f32.gmra.mrb[14].mxu1 %v90_v30 }
  0xb4   :  { %554 = vmatmul.mubr.f32.gmra.mrb[14].mxu0 %v92_v31  ;;  %398 = vmatprep.mubr.f32.mxu1 %v95_v32 }
  0xb5   :  { %559 = vmatprep.mubr.f32.mxu0 %v97_v33 }
  0xb7   :  { %399 = vmatmul.mubr.f32.gmra.mrb[16].mxu1 %v94_v34 }
  0xb8   :  { %560 = vmatmul.mubr.f32.gmra.mrb[16].mxu0 %v96_v35  ;;  %404 = vmatprep.mubr.f32.mxu1 %v99_v36 }
  0xb9   :  { %565 = vmatprep.mubr.f32.mxu0 %v101_v37 }
  0xbb   :  { %405 = vmatmul.mubr.f32.gmra.mrb[18].mxu1 %v98_v38 }
  0xbc   :  { %566 = vmatmul.mubr.f32.gmra.mrb[18].mxu0 %v100_v39  ;;  %410 = vmatprep.mubr.f32.mxu1 %v103_v40 }
  0xbd   :  { %571 = vmatprep.mubr.f32.mxu0 %v105_v41 }
  0xbf   :  { %411 = vmatmul.mubr.f32.gmra.mrb[20].mxu1 %v102_v42 }
  0xc0   :  { %572 = vmatmul.mubr.f32.gmra.mrb[20].mxu0 %v104_v43  ;;  %416 = vmatprep.mubr.f32.mxu1 %v107_v44 }
  0xc1   :  { %577 = vmatprep.mubr.f32.mxu0 %v109_v45 }
  0xc3   :  { %417 = vmatmul.mubr.f32.gmra.mrb[22].mxu1 %v106_v46 }
  0xc4   :  { %578 = vmatmul.mubr.f32.gmra.mrb[22].mxu0 %v108_v47  ;;  %422 = vmatprep.mubr.f32.mxu1 %v111_v48 }
  0xc5   :  { %583 = vmatprep.mubr.f32.mxu0 %v113_v49 }
  0xc7   :  { %423 = vmatmul.mubr.f32.gmra.mrb[24].mxu1 %v110_v50 }
  0xc8   :  { %584 = vmatmul.mubr.f32.gmra.mrb[24].mxu0 %v112_v51  ;;  %428 = vmatprep.mubr.f32.mxu1 %v115_v52 }
  0xc9   :  { %589 = vmatprep.mubr.f32.mxu0 %v117_v53 }
  0xcb   :  { %429 = vmatmul.mubr.f32.gmra.mrb[26].mxu1 %v114_v54 }
  0xcc   :  { %590 = vmatmul.mubr.f32.gmra.mrb[26].mxu0 %v116_v55  ;;  %434 = vmatprep.mubr.f32.mxu1 %v119_v56 }
  0xcd   :  { %595 = vmatprep.mubr.f32.mxu0 %v121_v57 }
  0xcf   :  { %435 = vmatmul.mubr.f32.gmra.mrb[28].mxu1 %v118_v58 }
  0xd0   :  { %596 = vmatmul.mubr.f32.gmra.mrb[28].mxu0 %v120_v59  ;;  %440 = vmatprep.mubr.f32.mxu1 %v123_v60 }
  0xd1   :  { %601 = vmatprep.mubr.f32.mxu0 %v125_v61 }
  0xd3   :  { %441 = vmatmul.mubr.f32.gmra.mrb[30].mxu1 %v122_v62 }
  0xd4   :  { %602 = vmatmul.mubr.f32.gmra.mrb[30].mxu0 %v124_v63 }
 0x16a   :  { %v352_v0 = vpop.f32.mrb[0].mxu1 }
 0x16b   :  { %v513_v1 = vpop.f32.mrb[0].mxu0  ;;  %v354_v2 = vpop.f32.mrb[1].mxu1 }
 0x16c   :  { %v514_v3 = vadd.f32 %v513_v1, %v352_v0  ;;  %v515_v4 = vpop.f32.mrb[1].mxu0 }
 0x16d   :  { %v516_v5 = vadd.f32 %v515_v4, %v354_v2 }
 0x16e   :  { %v358_v6 = vpop.f32.mrb[2].mxu1  ;;  %640 = vst [vmem:[#allocation5] sm:$0xff] %v514_v3 }
 0x16f   :  { %v519_v7 = vpop.f32.mrb[2].mxu0  ;;  %v360_v8 = vpop.f32.mrb[3].mxu1  ;;  %641 = vst [vmem:[#allocation5 + $0x8] sm:$0xff] %v516_v5 }
 0x170   :  { %v520_v9 = vadd.f32 %v519_v7, %v358_v6  ;;  %v521_v10 = vpop.f32.mrb[3].mxu0 }
 0x171   :  { %v522_v11 = vadd.f32 %v521_v10, %v360_v8 }
 0x172   :  { %v364_v12 = vpop.f32.mrb[4].mxu1  ;;  %642 = vst [vmem:[#allocation5 + $0x10] sm:$0xff] %v520_v9 }
 0x173   :  { %v525_v13 = vpop.f32.mrb[4].mxu0  ;;  %v366_v14 = vpop.f32.mrb[5].mxu1  ;;  %643 = vst [vmem:[#allocation5 + $0x18] sm:$0xff] %v522_v11 }
 0x174   :  { %v526_v15 = vadd.f32 %v525_v13, %v364_v12  ;;  %v527_v16 = vpop.f32.mrb[5].mxu0 }
 0x175   :  { %v528_v17 = vadd.f32 %v527_v16, %v366_v14 }
 0x176   :  { %v370_v18 = vpop.f32.mrb[6].mxu1  ;;  %644 = vst [vmem:[#allocation5 + $0x20] sm:$0xff] %v526_v15 }
 0x177   :  { %v531_v19 = vpop.f32.mrb[6].mxu0  ;;  %v372_v20 = vpop.f32.mrb[7].mxu1  ;;  %645 = vst [vmem:[#allocation5 + $0x28] sm:$0xff] %v528_v17 }
 0x178   :  { %v532_v21 = vadd.f32 %v531_v19, %v370_v18  ;;  %v533_v22 = vpop.f32.mrb[7].mxu0 }
 0x179   :  { %v534_v23 = vadd.f32 %v533_v22, %v372_v20 }
 0x17a   :  { %v376_v24 = vpop.f32.mrb[8].mxu1  ;;  %646 = vst [vmem:[#allocation5 + $0x30] sm:$0xff] %v532_v21 }
 0x17b   :  { %v537_v25 = vpop.f32.mrb[8].mxu0  ;;  %v378_v26 = vpop.f32.mrb[9].mxu1  ;;  %647 = vst [vmem:[#allocation5 + $0x38] sm:$0xff] %v534_v23 }
 0x17c   :  { %v538_v27 = vadd.f32 %v537_v25, %v376_v24  ;;  %v539_v28 = vpop.f32.mrb[9].mxu0 }
 0x17d   :  { %v540_v29 = vadd.f32 %v539_v28, %v378_v26 }
 0x17e   :  { %v382_v30 = vpop.f32.mrb[10].mxu1  ;;  %648 = vst [vmem:[#allocation5 + $0x40] sm:$0xff] %v538_v27 }
 0x17f   :  { %v543_v31 = vpop.f32.mrb[10].mxu0  ;;  %v384_v32 = vpop.f32.mrb[11].mxu1  ;;  %649 = vst [vmem:[#allocation5 + $0x48] sm:$0xff] %v540_v29 }
 0x180   :  { %v544_v33 = vadd.f32 %v543_v31, %v382_v30  ;;  %v545_v34 = vpop.f32.mrb[11].mxu0 }
 0x181   :  { %v546_v35 = vadd.f32 %v545_v34, %v384_v32 }
 0x182   :  { %v388_v36 = vpop.f32.mrb[12].mxu1  ;;  %650 = vst [vmem:[#allocation5 + $0x50] sm:$0xff] %v544_v33 }
 0x183   :  { %v549_v37 = vpop.f32.mrb[12].mxu0  ;;  %v390_v38 = vpop.f32.mrb[13].mxu1  ;;  %651 = vst [vmem:[#allocation5 + $0x58] sm:$0xff] %v546_v35 }
 0x184   :  { %v550_v39 = vadd.f32 %v549_v37, %v388_v36  ;;  %v551_v40 = vpop.f32.mrb[13].mxu0 }
 0x185   :  { %v552_v41 = vadd.f32 %v551_v40, %v390_v38 }
 0x186   :  { %v394_v42 = vpop.f32.mrb[14].mxu1  ;;  %652 = vst [vmem:[#allocation5 + $0x60] sm:$0xff] %v550_v39 }
 0x187   :  { %v555_v43 = vpop.f32.mrb[14].mxu0  ;;  %v396_v44 = vpop.f32.mrb[15].mxu1  ;;  %653 = vst [vmem:[#allocation5 + $0x68] sm:$0xff] %v552_v41 }
 0x188   :  { %v556_v45 = vadd.f32 %v555_v43, %v394_v42  ;;  %v557_v46 = vpop.f32.mrb[15].mxu0 }
 0x189   :  { %v558_v47 = vadd.f32 %v557_v46, %v396_v44 }
 0x18a   :  { %v400_v48 = vpop.f32.mrb[16].mxu1  ;;  %654 = vst [vmem:[#allocation5 + $0x70] sm:$0xff] %v556_v45 }
 0x18b   :  { %v561_v49 = vpop.f32.mrb[16].mxu0  ;;  %v402_v50 = vpop.f32.mrb[17].mxu1  ;;  %655 = vst [vmem:[#allocation5 + $0x78] sm:$0xff] %v558_v47 }
 0x18c   :  { %v562_v51 = vadd.f32 %v561_v49, %v400_v48  ;;  %v563_v52 = vpop.f32.mrb[17].mxu0 }
 0x18d   :  { %v564_v53 = vadd.f32 %v563_v52, %v402_v50 }
 0x18e   :  { %v406_v54 = vpop.f32.mrb[18].mxu1  ;;  %656 = vst [vmem:[#allocation5 + $0x80] sm:$0xff] %v562_v51 }
 0x18f   :  { %v567_v55 = vpop.f32.mrb[18].mxu0  ;;  %v408_v56 = vpop.f32.mrb[19].mxu1  ;;  %657 = vst [vmem:[#allocation5 + $0x88] sm:$0xff] %v564_v53 }
 0x190   :  { %v568_v57 = vadd.f32 %v567_v55, %v406_v54  ;;  %v569_v58 = vpop.f32.mrb[19].mxu0 }
 0x191   :  { %v570_v59 = vadd.f32 %v569_v58, %v408_v56 }
 0x192   :  { %v412_v60 = vpop.f32.mrb[20].mxu1  ;;  %658 = vst [vmem:[#allocation5 + $0x90] sm:$0xff] %v568_v57 }
 0x193   :  { %v573_v61 = vpop.f32.mrb[20].mxu0  ;;  %v414_v62 = vpop.f32.mrb[21].mxu1  ;;  %659 = vst [vmem:[#allocation5 + $0x98] sm:$0xff] %v570_v59 }
 0x194   :  { %v574_v63 = vadd.f32 %v573_v61, %v412_v60  ;;  %v575_v0 = vpop.f32.mrb[21].mxu0 }
 0x195   :  { %v576_v1 = vadd.f32 %v575_v0, %v414_v62 }
 0x196   :  { %v418_v2 = vpop.f32.mrb[22].mxu1  ;;  %660 = vst [vmem:[#allocation5 + $0xa0] sm:$0xff] %v574_v63 }
 0x197   :  { %v579_v3 = vpop.f32.mrb[22].mxu0  ;;  %v420_v4 = vpop.f32.mrb[23].mxu1  ;;  %661 = vst [vmem:[#allocation5 + $0xa8] sm:$0xff] %v576_v1 }
 0x198   :  { %v580_v5 = vadd.f32 %v579_v3, %v418_v2  ;;  %v581_v6 = vpop.f32.mrb[23].mxu0 }
 0x199   :  { %v582_v7 = vadd.f32 %v581_v6, %v420_v4 }
 0x19a   :  { %v424_v8 = vpop.f32.mrb[24].mxu1  ;;  %662 = vst [vmem:[#allocation5 + $0xb0] sm:$0xff] %v580_v5 }
 0x19b   :  { %v585_v9 = vpop.f32.mrb[24].mxu0  ;;  %v426_v10 = vpop.f32.mrb[25].mxu1  ;;  %663 = vst [vmem:[#allocation5 + $0xb8] sm:$0xff] %v582_v7 }
 0x19c   :  { %v586_v11 = vadd.f32 %v585_v9, %v424_v8  ;;  %v587_v12 = vpop.f32.mrb[25].mxu0 }
 0x19d   :  { %v588_v13 = vadd.f32 %v587_v12, %v426_v10 }
 0x19e   :  { %v430_v14 = vpop.f32.mrb[26].mxu1  ;;  %664 = vst [vmem:[#allocation5 + $0xc0] sm:$0xff] %v586_v11 }
 0x19f   :  { %v591_v15 = vpop.f32.mrb[26].mxu0  ;;  %v432_v16 = vpop.f32.mrb[27].mxu1  ;;  %665 = vst [vmem:[#allocation5 + $0xc8] sm:$0xff] %v588_v13 }
 0x1a0   :  { %v592_v17 = vadd.f32 %v591_v15, %v430_v14  ;;  %v593_v18 = vpop.f32.mrb[27].mxu0 }
 0x1a1   :  { %v594_v19 = vadd.f32 %v593_v18, %v432_v16 }
 0x1a2   :  { %v436_v20 = vpop.f32.mrb[28].mxu1  ;;  %666 = vst [vmem:[#allocation5 + $0xd0] sm:$0xff] %v592_v17 }
 0x1a3   :  { %v597_v21 = vpop.f32.mrb[28].mxu0  ;;  %v438_v22 = vpop.f32.mrb[29].mxu1  ;;  %667 = vst [vmem:[#allocation5 + $0xd8] sm:$0xff] %v594_v19 }
 0x1a4   :  { %v598_v23 = vadd.f32 %v597_v21, %v436_v20  ;;  %v599_v24 = vpop.f32.mrb[29].mxu0 }
 0x1a5   :  { %v600_v25 = vadd.f32 %v599_v24, %v438_v22 }
 0x1a6   :  { %v442_v26 = vpop.f32.mrb[30].mxu1  ;;  %668 = vst [vmem:[#allocation5 + $0xe0] sm:$0xff] %v598_v23 }
 0x1a7   :  { %v603_v27 = vpop.f32.mrb[30].mxu0  ;;  %v444_v28 = vpop.f32.mrb[31].mxu1  ;;  %669 = vst [vmem:[#allocation5 + $0xe8] sm:$0xff] %v600_v25 }
 0x1a8   :  { %v604_v29 = vadd.f32 %v603_v27, %v442_v26  ;;  %v605_v30 = vpop.f32.mrb[31].mxu0 }
 0x1a9   :  { %v606_v31 = vadd.f32 %v605_v30, %v444_v28 }
 0x1aa   :  { %670 = vst [vmem:[#allocation5 + $0xf0] sm:$0xff] %v604_v29 }
 0x1ab   :  { %671 = vst [vmem:[#allocation5 + $0xf8] sm:$0xff] %v606_v31 }
 0x1ac   :  { %889 = shalt.err (!%p886_p12)
}
 0x1ad   :  { %s890_s10 = scalar_lea.hbm %s1143_s2, 4096 }
 0x1ae   :  { %p891_p13 = scmp.ne.s32.totalorder %s1143_s2, %s890_s10  ;;  %p894_p0 = scmp.lt.u32.totalorder %s890_s10, %s1143_s2 }
 0x1b0   :  { %p896_p1 = pnand %p894_p0, %p891_p13 }
 0x1b2   :  { %899 = shalt.err (!%p896_p1)
}
 0x1b3   :  { %s908_s15 = smov 256   ;;  %s909_s16 = smov 16  }
 0x1b4   :  { %683 = dma.vmem_to_hbm [thread:$0]  %s678_s6, 4096, %s1143_s2, [#allocation4], %s908_s15, %s908_s15, %s909_s16  }
 0x1b5   :  { %902 = dma.done.wait [#allocation4], 4096  }
 0x1b6   :  { %903 = vsyncadd [#allocation4], 4294963200 }
 0x1b7   :  { %687 = vsyncpa [#allocation3], 1 }
 0x1b8   :  { %688 = vsyncpa [#allocation4], 1 }

</bundles_post_ra>
